<compile_context>
chip_gen: v5e
topology: v5e:2x2
jax: 0.10.0
libtpu: 0.0.40
codegen_flags: <defaults>
</compile_context>

<pallas_src>
import functools
import math

import jax
import jax.numpy as jnp
from jax.experimental import pallas as pl
from jax.experimental.pallas import tpu as pltpu


# --------------------------------------------------------------------------
# Fused Pallas kernel: one batch tile, BOTH attention directions.
# --------------------------------------------------------------------------
def _coattn_kernel(lang_ref, obj_ref, cm_ref, lm_ref, om_ref,
                   w_lang_in_ref, w_obj_in_ref, w_lang_out_ref, w_obj_out_ref,
                   new_lang_ref, new_obj_ref,
                   lang_proj_ref, obj_proj_ref):
    Bt, L, D = lang_ref.shape
    N = obj_ref.shape[1]

    # Fused input projections on the flattened (Bt*seq, D) slab, written to VMEM
    # scratch so the six q/k/v slabs are not all simultaneously live in vregs.
    #   w_lang_in = [lang_Wq | obj_Wk | obj_Wv]   (applied to lang tokens)
    #   w_obj_in  = [obj_Wq  | lang_Wk | lang_Wv] (applied to obj tokens)
    lang_bf = lang_ref[...].astype(jnp.bfloat16)      # bf16 MXU operands, f32 acc
    obj_bf = obj_ref[...].astype(jnp.bfloat16)
    lang_proj_ref[...] = jnp.dot(
        lang_bf.reshape(Bt * L, D), w_lang_in_ref[...],
        preferred_element_type=jnp.float32).reshape(Bt, L, 3 * D).astype(jnp.bfloat16)
    obj_proj_ref[...] = jnp.dot(
        obj_bf.reshape(Bt * N, D), w_obj_in_ref[...],
        preferred_element_type=jnp.float32).reshape(Bt, N, 3 * D).astype(jnp.bfloat16)

    scale = jnp.float32(1.0 / math.sqrt(D))
    neg = jnp.float32(-1e9)

    cm = cm_ref[...]          # (Bt, L, N) bf16 co-mask (native orientation only)
    lm = lm_ref[...]          # (Bt, 1, L) bf16 lang pad mask
    om = om_ref[...]          # (Bt, 1, N) bf16 obj  pad mask

    def masked_attention(q_bf, k_bf, v_bf, valid, wo_ref, q_in_ref, gate):
        # q_bf: (Bt,Q,D) bf16; k_bf/v_bf: (Bt,K,D) bf16; valid: (Bt,Q,K) bool.
        s = jnp.einsum('bqd,bkd->bqk', q_bf, k_bf,
                       preferred_element_type=jnp.float32) * scale
        s = jnp.where(valid, s, neg)                          # single select
        m = jnp.max(s, axis=-1, keepdims=True)
        p = jnp.exp(s - m)
        denom = jnp.sum(p, axis=-1, keepdims=True)
        attn = (p * pl.reciprocal(denom, approx=True)).astype(jnp.bfloat16)
        ctx = jnp.einsum('bqk,bkd->bqd', attn, v_bf,
                         preferred_element_type=jnp.float32)
        Q = q_bf.shape[1]
        out = jnp.dot(ctx.astype(jnp.bfloat16).reshape(Bt * Q, D), wo_ref[...],
                      preferred_element_type=jnp.float32).reshape(Bt, Q, D)
        # Residual; zero the update for padded query positions.
        return q_in_ref[...].astype(jnp.float32) + gate * out

    # ---- lang direction: lang queries attend over obj keys/values ----------
    valid_lang = (cm > 0) & (om > 0)                           # (Bt, L, N)
    lang_gate = jnp.swapaxes(lm.astype(jnp.float32), 1, 2)     # (Bt, L, 1)
    new_lang = masked_attention(
        lang_proj_ref[:, :, 0:D],                              # lang queries
        obj_proj_ref[:, :, D:2 * D],                           # obj-derived keys
        obj_proj_ref[:, :, 2 * D:3 * D],                       # obj-derived values
        valid_lang, w_lang_out_ref, lang_ref, lang_gate)
    new_lang_ref[...] = new_lang.astype(new_lang_ref.dtype)    # store before obj dir

    # ---- obj direction: obj queries attend over lang keys/values -----------
    # Orientation swap of the co-mask happens here (tiny f32 XLU transpose)
    # instead of materializing an extra (B, N, L) array in HBM.
    cm_t = jnp.swapaxes(cm.astype(jnp.float32), 1, 2)          # (Bt, N, L)
    valid_obj = (cm_t > 0) & (lm > 0)                          # (Bt, N, L)
    obj_gate = jnp.swapaxes(om.astype(jnp.float32), 1, 2)      # (Bt, N, 1)
    new_obj = masked_attention(
        obj_proj_ref[:, :, 0:D],                               # obj queries
        lang_proj_ref[:, :, D:2 * D],                          # lang-derived keys
        lang_proj_ref[:, :, 2 * D:3 * D],                      # lang-derived values
        valid_obj, w_obj_out_ref, obj_ref, obj_gate)
    new_obj_ref[...] = new_obj.astype(new_obj_ref.dtype)


# --------------------------------------------------------------------------
# One-time parameter preparation: fuse Wq/Wk/Wv into wide bf16 operands.
# --------------------------------------------------------------------------
def prepare_params(params, dtype=jnp.bfloat16):
    w_lang_in = jnp.concatenate(
        [params["lang_wq"], params["obj_wk"], params["obj_wv"]], axis=1).astype(dtype)
    w_obj_in = jnp.concatenate(
        [params["obj_wq"], params["lang_wk"], params["lang_wv"]], axis=1).astype(dtype)
    return {"w_lang_in": w_lang_in,
            "w_obj_in": w_obj_in,
            "w_lang_out": params["lang_wo"].astype(dtype),
            "w_obj_out": params["obj_wo"].astype(dtype)}


# --------------------------------------------------------------------------
# VMEM budgeting + batch-tile selection.
# --------------------------------------------------------------------------
def _vmem_bytes(bt, L, N, D, act_bytes):
    bf16 = 2
    stream_in = (bt * (L + N) * D * act_bytes            # lang/obj activation tiles
                 + bt * L * N * bf16                      # co-mask tile
                 + bt * (L + N) * bf16)                   # pad-mask tiles
    stream_out = bt * (L + N) * D * act_bytes             # new_lang/new_obj tiles
    weights = (2 * D * 3 * D + 2 * D * D) * bf16           # single-buffered weights
    scratch = bt * (L + N) * 3 * D * bf16                  # projection scratch
    return 2 * (stream_in + stream_out) + weights + scratch  # 2x = double-buffering


def _pick_batch_tile(B, L, N, D, act_bytes, vmem_budget=40 << 20):
    divisors = [d for d in range(1, B + 1) if B % d == 0]
    fitting = [d for d in divisors
               if _vmem_bytes(d, L, N, D, act_bytes) <= vmem_budget] or [1]
    # Keep >= 2 grid steps when possible so both v7x TensorCores get work; the
    # largest such tile maximizes the flattened MXU M (Bt*L / Bt*N rows) and
    # minimizes per-step pipeline overhead on every generation.
    multi = [d for d in fitting if B // d >= 2]
    return max(multi if multi else fitting)


# --------------------------------------------------------------------------
# CoAttentionLayer.forward equivalent (both sub-layers read the ORIGINAL args).
# --------------------------------------------------------------------------
def co_attention_layer(lang, obj, lang_mask, obj_mask, co_mask, prepared,
                       *, batch_tile=None):
    B, L, D = lang.shape
    N = obj.shape[1]
    act_bytes = jnp.dtype(lang.dtype).itemsize
    if batch_tile is None:
        batch_tile = _pick_batch_tile(B, L, N, D, act_bytes)
    assert B % batch_tile == 0, "batch_tile must divide B"
    Bt = batch_tile
    bf16 = jnp.bfloat16

    # Compact mask operands: bf16 (only compared > 0 in-kernel), ONE co-mask in
    # its native (B, L, N) orientation (the obj-direction transpose happens
    # in-kernel), pad masks shipped as (B, 1, L)/(B, 1, N) — no lane-width-1 blocks.
    cm = co_mask.astype(bf16)
    lm = lang_mask.astype(bf16)[:, None, :]
    om = obj_mask.astype(bf16)[:, None, :]

    est = _vmem_bytes(Bt, L, N, D, act_bytes)
    vmem_limit = int(min(64 << 20, max(32 << 20, 2 * est + (4 << 20))))

    def batch_spec(*tail):
        # Tile only the batch dim; last two dims stay full-extent.
        return pl.BlockSpec((Bt,) + tail, lambda b: (b,) + (0,) * len(tail))

    def weight_spec(shape):
        # Grid-invariant (constant index_map) weights: single-buffered to halve
        # their VMEM footprint (matters for large D on v7x's 64 MiB VMEM).
        return pl.BlockSpec(shape, lambda b: (0, 0), pipeline_mode=pl.Buffered(1))

    return pl.pallas_call(
        _coattn_kernel,
        out_shape=(jax.ShapeDtypeStruct((B, L, D), lang.dtype),
                   jax.ShapeDtypeStruct((B, N, D), obj.dtype)),
        grid_spec=pltpu.PrefetchScalarGridSpec(
            num_scalar_prefetch=0,
            grid=(B // Bt,),
            in_specs=[
                batch_spec(L, D),          # lang tokens
                batch_spec(N, D),          # obj tokens
                batch_spec(L, N),          # co-mask (bf16)
                batch_spec(1, L),          # lang pad mask (bf16)
                batch_spec(1, N),          # obj pad mask (bf16)
                weight_spec((D, 3 * D)),   # [lang_Wq | obj_Wk | obj_Wv]  bf16
                weight_spec((D, 3 * D)),   # [obj_Wq  | lang_Wk | lang_Wv] bf16
                weight_spec((D, D)),       # lang_Wo bf16
                weight_spec((D, D)),       # obj_Wo bf16
            ],
            out_specs=[batch_spec(L, D), batch_spec(N, D)],
            scratch_shapes=[pltpu.VMEM((Bt, L, 3 * D), jnp.bfloat16),
                            pltpu.VMEM((Bt, N, 3 * D), jnp.bfloat16)],
        ),
        compiler_params=pltpu.CompilerParams(
            dimension_semantics=("parallel",),
            vmem_limit_bytes=vmem_limit),
    )(lang, obj, cm, lm, om,
      prepared["w_lang_in"], prepared["w_obj_in"],
      prepared["w_lang_out"], prepared["w_obj_out"])


# --------------------------------------------------------------------------
# Pure-JAX reference (uses the raw, unfused weights; mirrors the bf16 MXU
# operands / f32 accumulation so the fusion bookkeeping is genuinely checked).
# --------------------------------------------------------------------------
def _cross_attention_ref(q, kv, q_mask, k_mask, co_mask, wq, wk, wv, wo):
    bf, f32 = jnp.bfloat16, jnp.float32
    qb, kvb = q.astype(bf), kv.astype(bf)
    Q = jnp.einsum("bld,de->ble", qb, wq.astype(bf), preferred_element_type=f32)
    K = jnp.einsum("bld,de->ble", kvb, wk.astype(bf), preferred_element_type=f32)
    V = jnp.einsum("bld,de->ble", kvb, wv.astype(bf), preferred_element_type=f32)
    D = Q.shape[-1]
    s = jnp.einsum("bqd,bkd->bqk", Q.astype(bf), K.astype(bf),
                   preferred_element_type=f32) / jnp.sqrt(jnp.float32(D))
    mask = co_mask.astype(f32) * k_mask[:, None, :].astype(f32)
    s = jnp.where(mask > 0, s, jnp.float32(-1e9))
    attn = jax.nn.softmax(s, axis=-1)
    ctx = jnp.einsum("bqk,bkd->bqd", attn.astype(bf), V.astype(bf),
                     preferred_element_type=f32)
    out = jnp.einsum("bqd,de->bqe", ctx.astype(bf), wo.astype(bf),
                     preferred_element_type=f32)
    return q.astype(f32) + q_mask[:, :, None].astype(f32) * out


def co_attention_layer_ref(lang, obj, lang_mask, obj_mask, co_mask, params):
    new_obj = _cross_attention_ref(
        obj, lang, obj_mask, lang_mask, jnp.swapaxes(co_mask, 1, 2),
        params["obj_wq"], params["obj_wk"], params["obj_wv"], params["obj_wo"])
    new_lang = _cross_attention_ref(
        lang, obj, lang_mask, obj_mask, co_mask,
        params["lang_wq"], params["lang_wk"], params["lang_wv"], params["lang_wo"])
    return new_lang, new_obj


# --------------------------------------------------------------------------
# Deterministic parameter init + demo.
# --------------------------------------------------------------------------
def init_params(key, hidden):
    names = ["lang_wq", "lang_wk", "lang_wv", "lang_wo",
             "obj_wq", "obj_wk", "obj_wv", "obj_wo"]
    keys = jax.random.split(key, len(names))
    return {n: (jax.random.normal(k, (hidden, hidden), jnp.float32) * 0.05)
            for n, k in zip(names, keys)}


if __name__ == "__main__":
    # batch, lang tokens, objects, hidden (D=128 => lane-dense, 128-aligned slices)
    B, L, N, D = 8, 8, 16, 128

    root = jax.random.PRNGKey(0)
    k_lang, k_obj, k_par = jax.random.split(root, 3)

    lang = jax.random.normal(k_lang, (B, L, D), jnp.float32)
    obj = jax.random.normal(k_obj, (B, N, D), jnp.float32)

    # Deterministic masks with some padded positions.
    lang_valid = jnp.array([L, L - 2, L - 3, L, L - 1, L, L - 4, L])
    obj_valid = jnp.array([N, N - 5, N, N - 7, N - 3, N, N - 1, N])
    lang_mask = (jnp.arange(L)[None, :] < lang_valid[:, None]).astype(jnp.float32)
    obj_mask = (jnp.arange(N)[None, :] < obj_valid[:, None]).astype(jnp.float32)
    co_mask = lang_mask[:, :, None] * obj_mask[:, None, :]          # (B, L, N)

    params = init_params(k_par, D)
    prepared = prepare_params(params)   # fuse + bf16-cast weights once

    fwd = jax.jit(co_attention_layer)   # auto batch_tile -> Bt=4, grid=(2,)
    new_lang, new_obj = fwd(lang, obj, lang_mask, obj_mask, co_mask, prepared)
    jax.block_until_ready((new_lang, new_obj))

    ref_lang, ref_obj = co_attention_layer_ref(
        lang, obj, lang_mask, obj_mask, co_mask, params)

    assert new_lang.shape == (B, L, D) and new_obj.shape == (B, N, D)
    assert jnp.allclose(new_lang, ref_lang, atol=2e-2, rtol=2e-2)
    assert jnp.allclose(new_obj, ref_obj, atol=2e-2, rtol=2e-2)

    print("KERNEL_OK")
</pallas_src>

<mosaic_0001>
module attributes {stable_mosaic.version = 11 : i64} {
  func.func @_coattn_kernel(%arg0: i32, %arg1: memref<4x8x128xf32, #tpu.memory_space<vmem>>, %arg2: memref<4x16x128xf32, #tpu.memory_space<vmem>>, %arg3: memref<4x8x16xbf16, #tpu.memory_space<vmem>>, %arg4: memref<4x1x8xbf16, #tpu.memory_space<vmem>>, %arg5: memref<4x1x16xbf16, #tpu.memory_space<vmem>>, %arg6: memref<128x384xbf16, #tpu.memory_space<vmem>>, %arg7: memref<128x384xbf16, #tpu.memory_space<vmem>>, %arg8: memref<128x128xbf16, #tpu.memory_space<vmem>>, %arg9: memref<128x128xbf16, #tpu.memory_space<vmem>>, %arg10: memref<4x8x128xf32, #tpu.memory_space<vmem>>, %arg11: memref<4x16x128xf32, #tpu.memory_space<vmem>>, %arg12: memref<4x8x384xbf16, #tpu.memory_space<vmem>>, %arg13: memref<4x16x384xbf16, #tpu.memory_space<vmem>>) attributes {dimension_semantics = [#tpu.dimension_semantics<parallel>], iteration_bounds = array<i64: 2>, scalar_prefetch = 0 : i64, scratch_operands = 2 : i64, tpu.core_type = #tpu.core_type<tc>, window_params = [{transform_indices = @transform_0, window_bounds = array<i64: 4, 8, 128>}, {transform_indices = @transform_1, window_bounds = array<i64: 4, 16, 128>}, {transform_indices = @transform_2, window_bounds = array<i64: 4, 8, 16>}, {transform_indices = @transform_3, window_bounds = array<i64: 4, 1, 8>}, {transform_indices = @transform_4, window_bounds = array<i64: 4, 1, 16>}, {pipeline_mode = #tpu.pipeline_mode<synchronous>, transform_indices = @transform_5, window_bounds = array<i64: 128, 384>}, {pipeline_mode = #tpu.pipeline_mode<synchronous>, transform_indices = @transform_6, window_bounds = array<i64: 128, 384>}, {pipeline_mode = #tpu.pipeline_mode<synchronous>, transform_indices = @transform_7, window_bounds = array<i64: 128, 128>}, {pipeline_mode = #tpu.pipeline_mode<synchronous>, transform_indices = @transform_8, window_bounds = array<i64: 128, 128>}, {transform_indices = @transform_9, window_bounds = array<i64: 4, 8, 128>}, {transform_indices = @transform_10, window_bounds = array<i64: 4, 16, 128>}]} {
    %c0 = arith.constant 0 : index
    %c0_0 = arith.constant 0 : index
    %c0_1 = arith.constant 0 : index
    %0 = vector.load %arg1[%c0, %c0_0, %c0_1] : memref<4x8x128xf32, #tpu.memory_space<vmem>>, vector<4x8x128xf32>
    %1 = arith.truncf %0 : vector<4x8x128xf32> to vector<4x8x128xbf16>
    %c0_2 = arith.constant 0 : index
    %c0_3 = arith.constant 0 : index
    %c0_4 = arith.constant 0 : index
    %2 = vector.load %arg2[%c0_2, %c0_3, %c0_4] : memref<4x16x128xf32, #tpu.memory_space<vmem>>, vector<4x16x128xf32>
    %3 = arith.truncf %2 : vector<4x16x128xf32> to vector<4x16x128xbf16>
    %4 = vector.shape_cast %1 : vector<4x8x128xbf16> to vector<32x128xbf16>
    %c0_5 = arith.constant 0 : index
    %c0_6 = arith.constant 0 : index
    %5 = vector.load %arg6[%c0_5, %c0_6] : memref<128x384xbf16, #tpu.memory_space<vmem>>, vector<128x384xbf16>
    %cst = arith.constant dense<0.000000e+00> : vector<32x384xf32>
    %6 = tpu.matmul %4, %5, %cst {dimension_numbers = #tpu.dot_dimension_numbers<[1], [0], [0], [1], [0, 0, 1, 1], [], []>} : vector<32x128xbf16>, vector<128x384xbf16>, vector<32x384xf32> -> vector<32x384xf32>
    %7 = vector.shape_cast %6 : vector<32x384xf32> to vector<4x8x384xf32>
    %8 = arith.truncf %7 : vector<4x8x384xf32> to vector<4x8x384xbf16>
    %c0_7 = arith.constant 0 : index
    %c0_8 = arith.constant 0 : index
    %c0_9 = arith.constant 0 : index
    %9 = vector.load %arg12[%c0_7, %c0_8, %c0_9] : memref<4x8x384xbf16, #tpu.memory_space<vmem>>, vector<4x8x384xbf16>
    tpu.vector_store %arg12[%c0_7, %c0_8, %c0_9], %8 {strides = array<i32>} : memref<4x8x384xbf16, #tpu.memory_space<vmem>>, vector<4x8x384xbf16>,
    %10 = vector.shape_cast %3 : vector<4x16x128xbf16> to vector<64x128xbf16>
    %c0_10 = arith.constant 0 : index
    %c0_11 = arith.constant 0 : index
    %11 = vector.load %arg7[%c0_10, %c0_11] : memref<128x384xbf16, #tpu.memory_space<vmem>>, vector<128x384xbf16>
    %cst_12 = arith.constant dense<0.000000e+00> : vector<64x384xf32>
    %12 = tpu.matmul %10, %11, %cst_12 {dimension_numbers = #tpu.dot_dimension_numbers<[1], [0], [0], [1], [0, 0, 1, 1], [], []>} : vector<64x128xbf16>, vector<128x384xbf16>, vector<64x384xf32> -> vector<64x384xf32>
    %13 = vector.shape_cast %12 : vector<64x384xf32> to vector<4x16x384xf32>
    %14 = arith.truncf %13 : vector<4x16x384xf32> to vector<4x16x384xbf16>
    %c0_13 = arith.constant 0 : index
    %c0_14 = arith.constant 0 : index
    %c0_15 = arith.constant 0 : index
    %15 = vector.load %arg13[%c0_13, %c0_14, %c0_15] : memref<4x16x384xbf16, #tpu.memory_space<vmem>>, vector<4x16x384xbf16>
    tpu.vector_store %arg13[%c0_13, %c0_14, %c0_15], %14 {strides = array<i32>} : memref<4x16x384xbf16, #tpu.memory_space<vmem>>, vector<4x16x384xbf16>,
    %c0_16 = arith.constant 0 : index
    %c0_17 = arith.constant 0 : index
    %c0_18 = arith.constant 0 : index
    %16 = vector.load %arg3[%c0_16, %c0_17, %c0_18] : memref<4x8x16xbf16, #tpu.memory_space<vmem>>, vector<4x8x16xbf16>
    %c0_19 = arith.constant 0 : index
    %c0_20 = arith.constant 0 : index
    %c0_21 = arith.constant 0 : index
    %17 = vector.load %arg4[%c0_19, %c0_20, %c0_21] : memref<4x1x8xbf16, #tpu.memory_space<vmem>>, vector<4x1x8xbf16>
    %c0_22 = arith.constant 0 : index
    %c0_23 = arith.constant 0 : index
    %c0_24 = arith.constant 0 : index
    %18 = vector.load %arg5[%c0_22, %c0_23, %c0_24] : memref<4x1x16xbf16, #tpu.memory_space<vmem>>, vector<4x1x16xbf16>
    %cst_25 = arith.constant 0.000000e+00 : bf16
    %19 = vector.broadcast %cst_25 : bf16 to vector<4x8x16xbf16>
    %20 = arith.cmpf ogt, %16, %19 : vector<4x8x16xbf16>
    %cst_26 = arith.constant 0.000000e+00 : bf16
    %21 = vector.broadcast %cst_26 : bf16 to vector<4x1x16xbf16>
    %22 = arith.cmpf ogt, %18, %21 : vector<4x1x16xbf16>
    %23 = vector.broadcast %22 : vector<4x1x16xi1> to vector<4x8x16xi1>
    %24 = arith.andi %20, %23 : vector<4x8x16xi1>
    %25 = arith.extf %17 : vector<4x1x8xbf16> to vector<4x1x8xf32>
    %26 = tpu.transpose %25, [0, 2, 1] : vector<4x1x8xf32> -> vector<4x8x1xf32>
    %c0_27 = arith.constant 0 : index
    %c0_28 = arith.constant 0 : index
    %c0_29 = arith.constant 0 : index
    %27 = vector.load %arg12[%c0_27, %c0_28, %c0_29] : memref<4x8x384xbf16, #tpu.memory_space<vmem>>, vector<4x8x128xbf16>
    %c0_30 = arith.constant 0 : index
    %c0_31 = arith.constant 0 : index
    %c128 = arith.constant 128 : index
    %28 = vector.load %arg13[%c0_30, %c0_31, %c128] : memref<4x16x384xbf16, #tpu.memory_space<vmem>>, vector<4x16x128xbf16>
    %c0_32 = arith.constant 0 : index
    %c0_33 = arith.constant 0 : index
    %c256 = arith.constant 256 : index
    %29 = vector.load %arg13[%c0_32, %c0_33, %c256] : memref<4x16x384xbf16, #tpu.memory_space<vmem>>, vector<4x16x128xbf16>
    "tpu.trace_start"() <{level = 10 : i32, message = "bqd,bkd->bqk"}> : () -> ()
    %cst_34 = arith.constant dense<0.000000e+00> : vector<4x8x16xf32>
    %30 = tpu.matmul %27, %28, %cst_34 {dimension_numbers = #tpu.dot_dimension_numbers<[2], [2], [1], [1], [0, 0, 0, 1, 1, 1], [0], [0]>} : vector<4x8x128xbf16>, vector<4x16x128xbf16>, vector<4x8x16xf32> -> vector<4x8x16xf32>
    "tpu.trace_stop"() : () -> ()
    %cst_35 = arith.constant 0.0883883461 : f32
    %31 = vector.broadcast %cst_35 : f32 to vector<4x8x16xf32>
    %32 = arith.mulf %30, %31 : vector<4x8x16xf32>
    %cst_36 = arith.constant -1.000000e+09 : f32
    %33 = vector.broadcast %cst_36 : f32 to vector<4x8x16xf32>
    %34 = arith.select %24, %32, %33 : vector<4x8x16xi1>, vector<4x8x16xf32>
    %cst_37 = arith.constant dense<0xFF800000> : vector<4x8xf32>
    %35 = vector.multi_reduction <maximumf>, %34, %cst_37 [2] : vector<4x8x16xf32> to vector<4x8xf32>
    %36 = vector.shape_cast %35 : vector<4x8xf32> to vector<4x8x1xf32>
    %37 = vector.broadcast %36 : vector<4x8x1xf32> to vector<4x8x16xf32>
    %38 = arith.subf %34, %37 : vector<4x8x16xf32>
    %39 = math.exp %38 : vector<4x8x16xf32>
    %cst_38 = arith.constant dense<0.000000e+00> : vector<4x8xf32>
    %40 = vector.multi_reduction <add>, %39, %cst_38 [2] : vector<4x8x16xf32> to vector<4x8xf32>
    %41 = vector.shape_cast %40 : vector<4x8xf32> to vector<4x8x1xf32>
    %42 = tpu.reciprocal %41 {approx = true} : vector<4x8x1xf32> -> vector<4x8x1xf32>
    %43 = vector.broadcast %42 : vector<4x8x1xf32> to vector<4x8x16xf32>
    %44 = arith.mulf %39, %43 : vector<4x8x16xf32>
    %45 = arith.truncf %44 : vector<4x8x16xf32> to vector<4x8x16xbf16>
    "tpu.trace_start"() <{level = 10 : i32, message = "bqk,bkd->bqd"}> : () -> ()
    %cst_39 = arith.constant dense<0.000000e+00> : vector<4x8x128xf32>
    %46 = tpu.matmul %45, %29, %cst_39 {dimension_numbers = #tpu.dot_dimension_numbers<[2], [1], [1], [2], [0, 0, 0, 1, 1, 2], [0], [0]>} : vector<4x8x16xbf16>, vector<4x16x128xbf16>, vector<4x8x128xf32> -> vector<4x8x128xf32>
    "tpu.trace_stop"() : () -> ()
    %47 = arith.truncf %46 : vector<4x8x128xf32> to vector<4x8x128xbf16>
    %48 = vector.shape_cast %47 : vector<4x8x128xbf16> to vector<32x128xbf16>
    %c0_40 = arith.constant 0 : index
    %c0_41 = arith.constant 0 : index
    %49 = vector.load %arg8[%c0_40, %c0_41] : memref<128x128xbf16, #tpu.memory_space<vmem>>, vector<128x128xbf16>
    %cst_42 = arith.constant dense<0.000000e+00> : vector<32x128xf32>
    %50 = tpu.matmul %48, %49, %cst_42 {dimension_numbers = #tpu.dot_dimension_numbers<[1], [0], [0], [1], [0, 0, 1, 1], [], []>} : vector<32x128xbf16>, vector<128x128xbf16>, vector<32x128xf32> -> vector<32x128xf32>
    %51 = vector.shape_cast %50 : vector<32x128xf32> to vector<4x8x128xf32>
    %c0_43 = arith.constant 0 : index
    %c0_44 = arith.constant 0 : index
    %c0_45 = arith.constant 0 : index
    %52 = vector.load %arg1[%c0_43, %c0_44, %c0_45] : memref<4x8x128xf32, #tpu.memory_space<vmem>>, vector<4x8x128xf32>
    %53 = vector.broadcast %26 : vector<4x8x1xf32> to vector<4x8x128xf32>
    %54 = arith.mulf %53, %51 : vector<4x8x128xf32>
    %55 = arith.addf %52, %54 : vector<4x8x128xf32>
    %c0_46 = arith.constant 0 : index
    %c0_47 = arith.constant 0 : index
    %c0_48 = arith.constant 0 : index
    %56 = vector.load %arg10[%c0_46, %c0_47, %c0_48] : memref<4x8x128xf32, #tpu.memory_space<vmem>>, vector<4x8x128xf32>
    tpu.vector_store %arg10[%c0_46, %c0_47, %c0_48], %55 {strides = array<i32>} : memref<4x8x128xf32, #tpu.memory_space<vmem>>, vector<4x8x128xf32>,
    %57 = arith.extf %16 : vector<4x8x16xbf16> to vector<4x8x16xf32>
    %58 = tpu.transpose %57, [0, 2, 1] : vector<4x8x16xf32> -> vector<4x16x8xf32>
    %cst_49 = arith.constant 0.000000e+00 : f32
    %59 = vector.broadcast %cst_49 : f32 to vector<4x16x8xf32>
    %60 = arith.cmpf ogt, %58, %59 : vector<4x16x8xf32>
    %cst_50 = arith.constant 0.000000e+00 : bf16
    %61 = vector.broadcast %cst_50 : bf16 to vector<4x1x8xbf16>
    %62 = arith.cmpf ogt, %17, %61 : vector<4x1x8xbf16>
    %63 = vector.broadcast %62 : vector<4x1x8xi1> to vector<4x16x8xi1>
    %64 = arith.andi %60, %63 : vector<4x16x8xi1>
    %65 = arith.extf %18 : vector<4x1x16xbf16> to vector<4x1x16xf32>
    %66 = tpu.transpose %65, [0, 2, 1] : vector<4x1x16xf32> -> vector<4x16x1xf32>
    %c0_51 = arith.constant 0 : index
    %c0_52 = arith.constant 0 : index
    %c0_53 = arith.constant 0 : index
    %67 = vector.load %arg13[%c0_51, %c0_52, %c0_53] : memref<4x16x384xbf16, #tpu.memory_space<vmem>>, vector<4x16x128xbf16>
    %c0_54 = arith.constant 0 : index
    %c0_55 = arith.constant 0 : index
    %c128_56 = arith.constant 128 : index
    %68 = vector.load %arg12[%c0_54, %c0_55, %c128_56] : memref<4x8x384xbf16, #tpu.memory_space<vmem>>, vector<4x8x128xbf16>
    %c0_57 = arith.constant 0 : index
    %c0_58 = arith.constant 0 : index
    %c256_59 = arith.constant 256 : index
    %69 = vector.load %arg12[%c0_57, %c0_58, %c256_59] : memref<4x8x384xbf16, #tpu.memory_space<vmem>>, vector<4x8x128xbf16>
    "tpu.trace_start"() <{level = 10 : i32, message = "bqd,bkd->bqk"}> : () -> ()
    %cst_60 = arith.constant dense<0.000000e+00> : vector<4x16x8xf32>
    %70 = tpu.matmul %67, %68, %cst_60 {dimension_numbers = #tpu.dot_dimension_numbers<[2], [2], [1], [1], [0, 0, 0, 1, 1, 1], [0], [0]>} : vector<4x16x128xbf16>, vector<4x8x128xbf16>, vector<4x16x8xf32> -> vector<4x16x8xf32>
    "tpu.trace_stop"() : () -> ()
    %cst_61 = arith.constant 0.0883883461 : f32
    %71 = vector.broadcast %cst_61 : f32 to vector<4x16x8xf32>
    %72 = arith.mulf %70, %71 : vector<4x16x8xf32>
    %cst_62 = arith.constant -1.000000e+09 : f32
    %73 = vector.broadcast %cst_62 : f32 to vector<4x16x8xf32>
    %74 = arith.select %64, %72, %73 : vector<4x16x8xi1>, vector<4x16x8xf32>
    %cst_63 = arith.constant dense<0xFF800000> : vector<4x16xf32>
    %75 = vector.multi_reduction <maximumf>, %74, %cst_63 [2] : vector<4x16x8xf32> to vector<4x16xf32>
    %76 = vector.shape_cast %75 : vector<4x16xf32> to vector<4x16x1xf32>
    %77 = vector.broadcast %76 : vector<4x16x1xf32> to vector<4x16x8xf32>
    %78 = arith.subf %74, %77 : vector<4x16x8xf32>
    %79 = math.exp %78 : vector<4x16x8xf32>
    %cst_64 = arith.constant dense<0.000000e+00> : vector<4x16xf32>
    %80 = vector.multi_reduction <add>, %79, %cst_64 [2] : vector<4x16x8xf32> to vector<4x16xf32>
    %81 = vector.shape_cast %80 : vector<4x16xf32> to vector<4x16x1xf32>
    %82 = tpu.reciprocal %81 {approx = true} : vector<4x16x1xf32> -> vector<4x16x1xf32>
    %83 = vector.broadcast %82 : vector<4x16x1xf32> to vector<4x16x8xf32>
    %84 = arith.mulf %79, %83 : vector<4x16x8xf32>
    %85 = arith.truncf %84 : vector<4x16x8xf32> to vector<4x16x8xbf16>
    "tpu.trace_start"() <{level = 10 : i32, message = "bqk,bkd->bqd"}> : () -> ()
    %cst_65 = arith.constant dense<0.000000e+00> : vector<4x16x128xf32>
    %86 = tpu.matmul %85, %69, %cst_65 {dimension_numbers = #tpu.dot_dimension_numbers<[2], [1], [1], [2], [0, 0, 0, 1, 1, 2], [0], [0]>} : vector<4x16x8xbf16>, vector<4x8x128xbf16>, vector<4x16x128xf32> -> vector<4x16x128xf32>
    "tpu.trace_stop"() : () -> ()
    %87 = arith.truncf %86 : vector<4x16x128xf32> to vector<4x16x128xbf16>
    %88 = vector.shape_cast %87 : vector<4x16x128xbf16> to vector<64x128xbf16>
    %c0_66 = arith.constant 0 : index
    %c0_67 = arith.constant 0 : index
    %89 = vector.load %arg9[%c0_66, %c0_67] : memref<128x128xbf16, #tpu.memory_space<vmem>>, vector<128x128xbf16>
    %cst_68 = arith.constant dense<0.000000e+00> : vector<64x128xf32>
    %90 = tpu.matmul %88, %89, %cst_68 {dimension_numbers = #tpu.dot_dimension_numbers<[1], [0], [0], [1], [0, 0, 1, 1], [], []>} : vector<64x128xbf16>, vector<128x128xbf16>, vector<64x128xf32> -> vector<64x128xf32>
    %91 = vector.shape_cast %90 : vector<64x128xf32> to vector<4x16x128xf32>
    %c0_69 = arith.constant 0 : index
    %c0_70 = arith.constant 0 : index
    %c0_71 = arith.constant 0 : index
    %92 = vector.load %arg2[%c0_69, %c0_70, %c0_71] : memref<4x16x128xf32, #tpu.memory_space<vmem>>, vector<4x16x128xf32>
    %93 = vector.broadcast %66 : vector<4x16x1xf32> to vector<4x16x128xf32>
    %94 = arith.mulf %93, %91 : vector<4x16x128xf32>
    %95 = arith.addf %92, %94 : vector<4x16x128xf32>
    %c0_72 = arith.constant 0 : index
    %c0_73 = arith.constant 0 : index
    %c0_74 = arith.constant 0 : index
    %96 = vector.load %arg11[%c0_72, %c0_73, %c0_74] : memref<4x16x128xf32, #tpu.memory_space<vmem>>, vector<4x16x128xf32>
    tpu.vector_store %arg11[%c0_72, %c0_73, %c0_74], %95 {strides = array<i32>} : memref<4x16x128xf32, #tpu.memory_space<vmem>>, vector<4x16x128xf32>,
    return
  }
  func.func @transform_0(%arg0: i32) -> (i32, i32, i32) {
    %c0_i32 = arith.constant 0 : i32
    %c0_i32_0 = arith.constant 0 : i32
    %c0_i32_1 = arith.constant 0 : i32
    return %arg0, %c0_i32, %c0_i32_0 : i32, i32, i32
  }
  func.func @transform_1(%arg0: i32) -> (i32, i32, i32) {
    %c0_i32 = arith.constant 0 : i32
    %c0_i32_0 = arith.constant 0 : i32
    %c0_i32_1 = arith.constant 0 : i32
    return %arg0, %c0_i32, %c0_i32_0 : i32, i32, i32
  }
  func.func @transform_2(%arg0: i32) -> (i32, i32, i32) {
    %c0_i32 = arith.constant 0 : i32
    %c0_i32_0 = arith.constant 0 : i32
    %c0_i32_1 = arith.constant 0 : i32
    return %arg0, %c0_i32, %c0_i32_0 : i32, i32, i32
  }
  func.func @transform_3(%arg0: i32) -> (i32, i32, i32) {
    %c0_i32 = arith.constant 0 : i32
    %c0_i32_0 = arith.constant 0 : i32
    %c0_i32_1 = arith.constant 0 : i32
    return %arg0, %c0_i32, %c0_i32_0 : i32, i32, i32
  }
  func.func @transform_4(%arg0: i32) -> (i32, i32, i32) {
    %c0_i32 = arith.constant 0 : i32
    %c0_i32_0 = arith.constant 0 : i32
    %c0_i32_1 = arith.constant 0 : i32
    return %arg0, %c0_i32, %c0_i32_0 : i32, i32, i32
  }
  func.func @transform_5(%arg0: i32) -> (i32, i32) {
    %c0_i32 = arith.constant 0 : i32
    %c0_i32_0 = arith.constant 0 : i32
    %c0_i32_1 = arith.constant 0 : i32
    return %c0_i32, %c0_i32_0 : i32, i32
  }
  func.func @transform_6(%arg0: i32) -> (i32, i32) {
    %c0_i32 = arith.constant 0 : i32
    %c0_i32_0 = arith.constant 0 : i32
    %c0_i32_1 = arith.constant 0 : i32
    return %c0_i32, %c0_i32_0 : i32, i32
  }
  func.func @transform_7(%arg0: i32) -> (i32, i32) {
    %c0_i32 = arith.constant 0 : i32
    %c0_i32_0 = arith.constant 0 : i32
    %c0_i32_1 = arith.constant 0 : i32
    return %c0_i32, %c0_i32_0 : i32, i32
  }
  func.func @transform_8(%arg0: i32) -> (i32, i32) {
    %c0_i32 = arith.constant 0 : i32
    %c0_i32_0 = arith.constant 0 : i32
    %c0_i32_1 = arith.constant 0 : i32
    return %c0_i32, %c0_i32_0 : i32, i32
  }
  func.func @transform_9(%arg0: i32) -> (i32, i32, i32) {
    %c0_i32 = arith.constant 0 : i32
    %c0_i32_0 = arith.constant 0 : i32
    %c0_i32_1 = arith.constant 0 : i32
    return %arg0, %c0_i32, %c0_i32_0 : i32, i32, i32
  }
  func.func @transform_10(%arg0: i32) -> (i32, i32, i32) {
    %c0_i32 = arith.constant 0 : i32
    %c0_i32_0 = arith.constant 0 : i32
    %c0_i32_1 = arith.constant 0 : i32
    return %arg0, %c0_i32, %c0_i32_0 : i32, i32, i32
  }
}

</mosaic_0001>

<bundles_post_ra>
// kernel: co_attention_layer.1
= control target key start
LH: loop header
LB: loop body
LE: loop exit
PB: predicated region body
PF: predicated region fallthrough
CT: control target
= control target key end

     0   :  { %s4200_s0 = inlined_call_operand.vmem [shape: f32[8,8,128], index: 0, kind: input, shape index: {}]   ;;  %s4201_s1 = inlined_call_operand.hbm [shape: f32[8,16,128], index: 1, kind: input, shape index: {}]   ;;  %s4202_s2 = inlined_call_operand.vmem [shape: bf16[8,8,16], index: 2, kind: input, shape index: {}]   ;;  %s4203_s3 = inlined_call_operand.vmem [shape: bf16[8,1,8], index: 3, kind: input, shape index: {}]   ;;  %s4204_s4 = inlined_call_operand.vmem [shape: bf16[8,1,16], index: 4, kind: input, shape index: {}]   ;;  %s4205_s5 = inlined_call_operand.hbm [shape: bf16[128,384], index: 5, kind: input, shape index: {}]   ;;  %s4206_s6 = inlined_call_operand.hbm [shape: bf16[128,384], index: 6, kind: input, shape index: {}]   ;;  %s4207_s7 = inlined_call_operand.hbm [shape: bf16[128,128], index: 7, kind: input, shape index: {}]   ;;  %s4208_s8 = inlined_call_operand.hbm [shape: bf16[128,128], index: 8, kind: input, shape index: {}]   ;;  %s4209_s9 = inlined_call_operand.hbm [shape: f32[8,8,128], index: 9, kind: output, shape index: {0}]   ;;  %s4210_s10 = inlined_call_operand.hbm [shape: f32[8,16,128], index: 10, kind: output, shape index: {1}]  }
   0x1   :  { %4212 = sst [smem:[#allocation22_spill]] %s4205_s5 }
   0x2   :  { %4213 = sst [smem:[#allocation23_spill]] %s4206_s6 }
   0x3   :  { %4214 = sst [smem:[#allocation24_spill]] %s4207_s7 }
   0x4   :  { %16 = vsyncpa [#allocation5], 0 }
   0x5   :  { %18 = vsyncpa [#allocation5 + $0x1], 0 }
   0x6   :  { %19 = vsyncpa [#allocation8], 0 }
   0x7   :  { %20 = vsyncpa [#allocation11], 0 }
   0x8   :  { %21 = vsyncpa [#allocation6], 0 }
   0x9   :  { %23 = vsyncpa [#allocation6 + $0x1], 0 }
   0xa   :  { %24 = vsyncpa [#allocation15], 0 }
   0xb   :  { %26 = vsyncpa [#allocation15 + $0x1], 0  ;;  %s3702_s13 = smov 0   ;;  %s3704_s14 = smov 0  }
   0xc   :  { %s3706_s15 = smov 0   ;;  %s3708_s16 = smov 0  }
   0xd LB: > { %s3723_s17 = sadd.s32 4294967295, %s3632_s16   ;;  %s2688_s18 = sadd.s32 4294967294, %s3632_s16   ;;  %s3632_s16 = sphi %s3708_s16, %s4239_s16   ;;  %s3628_s15 = sphi %s3706_s15, %s4238_s15   ;;  %s3624_s14 = sphi %s3704_s14, %s4237_s14   ;;  %s3620_s13 = sphi %s3702_s13, %s4236_s13  }
   0xe   : > { %p78_p0 = scmp.ne.s32.totalorder %s3624_s14, %s3620_s13  ;;  %p79_p1 = scmp.eq.s32.totalorder %s3723_s17, 0 }
   0xf   : > { %p264_p2 = scmp.eq.s32.totalorder %s3723_s17, 1  ;;  %p270_p3 = scmp.eq.s32.totalorder %s2688_s18, 1 }
  0x10   : > { %p3732_p4 = por %p79_p1, %p78_p0  ;;  %p2689_p5 = scmp.ge.s32.totalorder %s3632_s16, 1 }
  0x11   : > { %p3737_p6 = por %p270_p3, %p78_p0  ;;  %p303_p7 = scmp.lt.s32.totalorder %s3632_s16, 3 }
  0x12   : > { %s4218_s5 = sld [smem:[#allocation22_spill]]  ;;  %s3634_s25 = smov [#allocation7]  }
  0x13   : > { %s4216_s20 = scalar_select %p3737_p6, 1, 0 }
  0x14   : > { %p3745_p8 = pnand %p2689_p5, %p303_p7  ;;  %s316_s26 = sshll.u32 %s3634_s25, 4  ;;  %s317_s26 = int_to_ptr.vmem [resolvable:$true] %s316_s26 }
  0x15   : > { %4217 = sst [smem:[#allocation21_spill]] %s4216_s20  ;;  %s3635_s11 = smov 192  }
  0x16   : > { %p3154_p9 = pneg %p3745_p8  ;;  %s4221_s7 = sld [smem:[#allocation24_spill]] }
  0x17   : > { %s3636_s12 = smov 12   ;;  %s3637_s18 = smov [#allocation10]  }
  0x18   : > { %s314_s23 = sshll.u32 %s4218_s5, 4  ;;  %p3753_p10 = pnand %p3154_p9, %p79_p1  ;;  %s315_s23 = int_to_ptr.hbm [resolvable:$true] %s314_s23 }
  0x19   : > { %s344_s21 = sshll.u32 %s3637_s18, 4  ;;  %s3638_s22 = smov 64   ;;  %s345_s21 = int_to_ptr.vmem [resolvable:$true] %s344_s21 }
  0x1a   : > { %3157 = dma.hbm_to_vmem [thread:$0]  (!%p3753_p10), %s315_s23, 3072, %s317_s26, [#allocation8], %s3635_s11, %s3635_s11, %s3636_s12  }
  0x1b   : > { %s3639_s25 = smov 4   ;;  %s4222_s6 = sld [smem:[#allocation23_spill]] }
  0x1c   : > { %s342_s30 = sshll.u32 %s4221_s7, 4  ;;  %s3640_s23 = smov [#allocation9]   ;;  %s343_s30 = int_to_ptr.hbm [resolvable:$true] %s342_s30 }
  0x1d   : > { %3163 = dma.hbm_to_vmem [thread:$0]  (!%p3753_p10), %s343_s30, 1024, %s345_s21, [#allocation11], %s3638_s22, %s3638_s22, %s3639_s25  }
  0x1e   : > { %s330_s26 = sshll.u32 %s3640_s23, 4  ;;  %s356_s20 = sshll.u32 %s4208_s8, 4  ;;  %s331_s26 = int_to_ptr.vmem [resolvable:$true] %s330_s26  ;;  %s357_s20 = int_to_ptr.hbm [resolvable:$true] %s356_s20 }
  0x1f   : > { %s3641_s5 = smov [#allocation12]   ;;  %s3776_s21 = sadd.s32 1, %s3632_s16  }
  0x20   : > { %s358_s30 = sshll.u32 %s3641_s5, 4  ;;  %s65_s28 = sadd.s32 1, %s3628_s15  ;;  %s359_s30 = int_to_ptr.vmem [resolvable:$true] %s358_s30 }
  0x21   : > { %s328_s29 = sshll.u32 %s4222_s6, 4  ;;  %s62_s23 = ssub.s32 %s3632_s16, %s3776_s21  ;;  %s329_s29 = int_to_ptr.hbm [resolvable:$true] %s328_s29 }
  0x22   : > { %3160 = dma.hbm_to_vmem [thread:$0]  (!%p3753_p10), %s329_s29, 3072, %s331_s26, [#allocation8], %s3635_s11, %s3635_s11, %s3636_s12  }
  0x23   : > { %3166 = dma.hbm_to_vmem [thread:$0]  (!%p3753_p10), %s357_s20, 1024, %s359_s30, [#allocation11], %s3638_s22, %s3638_s22, %s3639_s25  }
  0x24   : > { %p72_p12 = scmp.ne.s32.totalorder %s3628_s15, %s3624_s14  ;;  %p63_p13 = scmp.eq.s32.totalorder %s62_s23, 0 }
  0x25   : > { %p73_p0 = scmp.eq.s32.totalorder %s3632_s16, 0  ;;  %p3182_p5 = scmp.lt.s32.totalorder %s3632_s16, 2 }
  0x26   : > { %p3786_p3 = por %p264_p2, %p72_p12  ;;  %s381_s12 = sand.u32 1, %s3628_s15  }
  0x27   : > { %s3792_s11 = scalar_select %p63_p13, %s3628_s15, %s65_s28  }
  0x28   : > { %p74_p7 = por %p73_p0, %p72_p12  ;;  %s2695_s27 = sshll.u32 %s381_s12, 6 }
  0x29   : > { %s3035_s20 = sshll.u32 %s3632_s16, 6  ;;  %s385_s26 = scalar_lea.vmem [#allocation4], %s2695_s27 }
  0x2a   : > { %s391_s29 = scalar_lea.hbm %s4201_s1, %s3035_s20  ;;  %s394_s18 = sshll.u32 %s385_s26, 4  ;;  %s395_s18 = int_to_ptr.vmem [resolvable:$true] %s394_s18 }
  0x2b   : > { %s392_s5 = sshll.u32 %s391_s29, 4  ;;  %p3799_p2 = pnand %p3182_p5, %p74_p7  ;;  %s393_s5 = int_to_ptr.hbm [resolvable:$true] %s392_s5 }
  0x2c   : > { %s382_s28 = scalar_lea.sflag [#allocation5], %s381_s12  ;;  %s3496_s23 = sshra.s32 %s393_s5, 4  ;;  %s3497_s23 = int_to_ptr.hbm [resolvable:$true] %s3496_s23 }
  0x2d   : > { %s3498_s6 = scalar_lea.hbm %s3497_s23, 64  ;;  %p3500_p10 = pneg %p3799_p2 }
  0x2e   : > { %p3499_p9 = scmp.ne.s32.totalorder %s3497_s23, %s3498_s6  ;;  %s3503_s22 = scalar_lea.hbm %s4201_s1, 128 }
  0x2f   : > { %p3504_p0 = scmp.lt.s32.totalorder %s3497_s23, %s4201_s1  ;;  %p3505_p5 = scmp.lt.s32.totalorder %s3503_s22, %s3498_s6 }
  0x30   : > { %p3501_p12 = pnand %p3500_p10, %p3499_p9 }
  0x31   : > { %p3506_p7 = por %p3505_p5, %p3504_p0 }
  0x32   : > { %p3502_p13 = pneg %p3501_p12 }
  0x34   : > { %p3507_p11 = pnand %p3506_p7, %p3502_p13 }
  0x36   : > { %3510 = shalt.err (!%p3507_p11)
}
  0x37   : > { %s3642_s12 = smov 128   ;;  %s3643_s26 = smov 8  }
  0x38   : > { %3170 = dma.hbm_to_vmem [thread:$0]  (!%p3799_p2), %s393_s5, 1024, %s395_s18, %s382_s28, %s3642_s12, %s3642_s12, %s3643_s26  }
  0x39   : > { %431 = sbr.rel (%p3745_p8) target bundleno = 1623 (0x657), region = 56  ;;  %s3816_s20 = sand.u32 (!%p3745_p8), 1, %s3624_s14  }
  0x3a   : > { %s2700_s23 = sshll.u32 (!%p3745_p8), %s3816_s20, 6  ;;  %s434_s6 = scalar_lea.sflag (!%p3745_p8), [#allocation5], %s3816_s20 }
  0x3b   : > { %s3822_s27 = scalar_lea.vmem (!%p3745_p8), [#allocation4], %s2700_s23 }
  0x3e   : > { %3599 = dma.done.wait (%p3732_p4), %s434_s6, 1024  }
  0x3f   : > { %3601 = vsyncadd (%p3732_p4), %s434_s6, 4294966272 }
  0x40   : > { %3603 = dma.done.wait (%p79_p1), [#allocation8], 6144  }
  0x41   : > { %3605 = vsyncadd (%p79_p1), [#allocation8], 4294961152 }
  0x42   : > { %3607 = dma.done.wait (%p79_p1), [#allocation11], 2048  }
  0x43   : > { %3609 = vsyncadd (%p79_p1), [#allocation11], 4294965248  ;;  %s2707_s24 = sshll.u32 %s3723_s17, 2  ;;  %v2799_v0 = vld [vmem:[#allocation7 + $0xa8] sm:$0xf]  ;;  %v552_v59 = vld [vmem:[%s3822_s27] sm:$0xff] }
  0x44   : > { %p3839_p8 = scmp.lt.s32.totalorder %s2707_s24, 7  ;;  %v3058_v1 = vld [vmem:[#allocation7 + $0xb0] sm:$0xf0]  ;;  %v3057_v2 = vld [vmem:[#allocation7 + $0xac] sm:$0xf]  ;;  %vm1396_vm4 = vcmask 130048  }
  0x45   : > { %v2800_v3 = vor.u32 %v3058_v1, %v2799_v0  ;;  %v2801_v4 = vld [vmem:[#allocation7 + $0xb4] sm:$0xf0]  ;;  %v2895_v5 = vld [vmem:[#allocation9 + $0xa8] sm:$0xf]  ;;  %v3082_v6 = vld [vmem:[#allocation9 + $0xb0] sm:$0xf0] }
  0x46   : > { %v2804_v7 = vor.u32 %v3057_v2, %v2801_v4  ;;  %v2896_v8 = vor.u32 %v3082_v6, %v2895_v5  ;;  %v2787_v9 = vld [vmem:[#allocation7 + $0x90] sm:$0xf]  ;;  %v3055_v10 = vld [vmem:[#allocation7 + $0x98] sm:$0xf0]  ;;  %v3054_v11 = vld [vmem:[#allocation7 + $0x94] sm:$0xf]  ;;  %v560_v4 = vpack.c.bf16 %v552_v59, %v552_v59 }
  0x47   : > { %740 = vmatpush.bf16.msra.mxu0 %v2800_v3  ;;  %v2788_v12 = vor.u32 %v3055_v10, %v2787_v9  ;;  %v2789_v13 = vld [vmem:[#allocation7 + $0x9c] sm:$0xf0]  ;;  %v2883_v14 = vld [vmem:[#allocation9 + $0x90] sm:$0xf]  ;;  %v3079_v15 = vld [vmem:[#allocation9 + $0x98] sm:$0xf0] }
  0x48   : > { %759 = vmatpush.bf16.msra.mxu1 %v2804_v7  ;;  %997 = vmatpush.bf16.msra.mxu3 %v2896_v8  ;;  %v2792_v16 = vor.u32 %v3054_v11, %v2789_v13  ;;  %v2884_v17 = vor.u32 %v3079_v15, %v2883_v14  ;;  %v2775_v18 = vld [vmem:[#allocation7 + $0x78] sm:$0xf]  ;;  %v3052_v19 = vld [vmem:[#allocation7 + $0x80] sm:$0xf0]  ;;  %v3051_v20 = vld [vmem:[#allocation7 + $0x7c] sm:$0xf] }
  0x49   : > { %v2777_v21 = vld [vmem:[#allocation7 + $0x84] sm:$0xf0]  ;;  %v2871_v22 = vld [vmem:[#allocation9 + $0x78] sm:$0xf]  ;;  %v3076_v23 = vld [vmem:[#allocation9 + $0x80] sm:$0xf0]  ;;  %v2776_v24 = vor.u32 %v3052_v19, %v2775_v18 }
  0x4a   : > { %s4241_s24 = smov (!%p3839_p8, %s2707_s24), 7  ;;  %v2780_v25 = vor.u32 %v3051_v20, %v2777_v21  ;;  %v2872_v26 = vor.u32 %v3076_v23, %v2871_v22  ;;  %v2763_v27 = vld [vmem:[#allocation7 + $0x60] sm:$0xf]  ;;  %v3049_v28 = vld [vmem:[#allocation7 + $0x68] sm:$0xf0]  ;;  %v853_v20 = vunpack.c.l.b16 %v560_v4  ;;  %s4124_s25 = scalar_lea.vmem [#allocation14], %s2700_s23 }
  0x4b   : > { %741 = vmatpush.bf16.msra.mxu0 %v2788_v12  ;;  %v3048_v29 = vld [vmem:[#allocation7 + $0x64] sm:$0xf]  ;;  %v2765_v30 = vld [vmem:[#allocation7 + $0x6c] sm:$0xf0]  ;;  %v2859_v31 = vld [vmem:[#allocation9 + $0x60] sm:$0xf]  ;;  %v2764_v33 = vor.u32 %v3049_v28, %v2763_v27  ;;  %s3907_s29 = scalar_lea.vmem %s4204_s4, %s4241_s24  ;;  %s3977_s30 = scalar_lea.vmem %s4203_s3, %s4241_s24 }
  0x4c   : > { %760 = vmatpush.bf16.msra.mxu1 %v2792_v16  ;;  %998 = vmatpush.bf16.msra.mxu3 %v2884_v17  ;;  %v3073_v32 = vld [vmem:[#allocation9 + $0x68] sm:$0xf0]  ;;  %s2708_s19 = sshll.u32 %s4241_s24, 3  ;;  %v2768_v34 = vor.u32 %v3048_v29, %v2765_v30  ;;  %v2751_v36 = vld [vmem:[#allocation7 + $0x48] sm:$0xf]  ;;  %s2710_s12 = sshll.u32 %s4241_s24, 2 }
  0x4d   : > { %v2860_v35 = vor.u32 %v3073_v32, %v2859_v31  ;;  %v3046_v37 = vld [vmem:[#allocation7 + $0x50] sm:$0xf0]  ;;  %v3045_v38 = vld [vmem:[#allocation7 + $0x4c] sm:$0xf]  ;;  %v2753_v39 = vld [vmem:[#allocation7 + $0x54] sm:$0xf0]  ;;  %s3853_s28 = scalar_lea.vmem %s4200_s0, %s2708_s19  ;;  %s529_s18 = scalar_lea.vmem %s4202_s2, %s2710_s12 }
  0x4e   : > { %v2847_v40 = vld [vmem:[#allocation9 + $0x48] sm:$0xf]  ;;  %v3070_v41 = vld [vmem:[#allocation9 + $0x50] sm:$0xf0]  ;;  %v2752_v42 = vor.u32 %v3046_v37, %v2751_v36  ;;  %v2756_v43 = vor.u32 %v3045_v38, %v2753_v39  ;;  %v2739_v45 = vld [vmem:[#allocation7 + $0x30] sm:$0xf] }
  0x4f   : > { %742 = vmatpush.bf16.msra.mxu0 %v2776_v24  ;;  %v2848_v44 = vor.u32 %v3070_v41, %v2847_v40  ;;  %v3043_v46 = vld [vmem:[#allocation7 + $0x38] sm:$0xf0]  ;;  %v3042_v47 = vld [vmem:[#allocation7 + $0x34] sm:$0xf]  ;;  %v2741_v48 = vld [vmem:[#allocation7 + $0x3c] sm:$0xf0] }
  0x50   : > { %761 = vmatpush.bf16.msra.mxu1 %v2780_v25  ;;  %999 = vmatpush.bf16.msra.mxu3 %v2872_v26  ;;  %v2835_v49 = vld [vmem:[#allocation9 + $0x30] sm:$0xf]  ;;  %v3067_v50 = vld [vmem:[#allocation9 + $0x38] sm:$0xf0]  ;;  %v2727_v51 = vld [vmem:[#allocation7 + $0x18] sm:$0xf]  ;;  %v2740_v52 = vor.u32 %v3043_v46, %v2739_v45  ;;  %v2744_v56 = vor.u32 %v3042_v47, %v2741_v48 }
  0x51   : > { %v3040_v53 = vld [vmem:[#allocation7 + $0x20] sm:$0xf0]  ;;  %v544_v54 = vld [vmem:[%s3853_s28] sm:$0xff]  ;;  %v545_v55 = vld [vmem:[%s3853_s28 + $0x8] sm:$0xff]  ;;  %v2836_v57 = vor.u32 %v3067_v50, %v2835_v49  ;;  %s2705_s24 = sshll.u32 %s3816_s20, 5  ;;  %s3112_s23 = sshll.u32 %s3723_s17, 5 }
  0x52   : > { %v3039_v58 = vld [vmem:[#allocation7 + $0x1c] sm:$0xf]  ;;  %v553_v60 = vld [vmem:[%s3822_s27 + $0x8] sm:$0xff]  ;;  %v2823_v62 = vld [vmem:[#allocation9 + $0x18] sm:$0xf]  ;;  %v548_v0 = vpack.c.bf16 %v544_v54, %v544_v54  ;;  %v549_v1 = vpack.c.bf16 %v545_v55, %v545_v55  ;;  %v2728_v2 = vor.u32 %v3040_v53, %v2727_v51  ;;  %s4116_s22 = scalar_lea.vmem [#allocation13], %s2705_s24  ;;  %s2480_s26 = scalar_lea.hbm %s4209_s9, %s3112_s23 }
  0x53   : > { %743 = vmatpush.bf16.msra.mxu0 %v2764_v33  ;;  %v2729_v61 = vld [vmem:[#allocation7 + $0x24] sm:$0xf0]  ;;  %v3064_v63 = vld [vmem:[#allocation9 + $0x20] sm:$0xf0]  ;;  %v2715_v3 = vld [vmem:[#allocation7] sm:$0xf]  ;;  %v561_v5 = vpack.c.bf16 %v553_v60, %v553_v60 }
  0x54   : > { %762 = vmatpush.bf16.msra.mxu1 %v2768_v34  ;;  %1000 = vmatpush.bf16.msra.mxu3 %v2860_v35  ;;  %v2732_v6 = vor.u32 %v3039_v58, %v2729_v61  ;;  %v2824_v7 = vor.u32 %v3064_v63, %v2823_v62  ;;  %v3037_v8 = vld [vmem:[#allocation7 + $0x8] sm:$0xf0]  ;;  %v3036_v9 = vld [vmem:[#allocation7 + $0x4] sm:$0xf]  ;;  %v2717_v10 = vld [vmem:[#allocation7 + $0xc] sm:$0xf0]  ;;  %v604_v14 = vunpack.c.l.b16 %v548_v0  ;;  %v605_v15 = vunpack.c.l.b16 %v549_v1 }
  0x55   : > { %v2811_v11 = vld [vmem:[#allocation9] sm:$0xf]  ;;  %v3061_v12 = vld [vmem:[#allocation9 + $0x8] sm:$0xf0]  ;;  %v2807_v13 = vld [vmem:[#allocation7 + $0xb0] sm:$0xf]  ;;  %v2716_v19 = vor.u32 %v3037_v8, %v2715_v3  ;;  %v854_v21 = vunpack.c.l.b16 %v561_v5  ;;  %v2720_v22 = vor.u32 %v3036_v9, %v2717_v10 }
  0x56   : > { %v3059_v16 = vld [vmem:[#allocation7 + $0xb8] sm:$0xf0]  ;;  %v3081_v17 = vld [vmem:[#allocation9 + $0xac] sm:$0xf]  ;;  %v2897_v18 = vld [vmem:[#allocation9 + $0xb4] sm:$0xf0]  ;;  %v2812_v23 = vor.u32 %v3061_v12, %v2811_v11  ;;  %v3859_v27 = vpack.c.b16 %v605_v15, %v604_v14 }
  0x57   : > { %744 = vmatpush.bf16.msra.mxu0 %v2752_v42  ;;  %v2808_v24 = vor.u32 %v3059_v16, %v2807_v13  ;;  %v2900_v25 = vor.u32 %v3081_v17, %v2897_v18  ;;  %v2795_v26 = vld [vmem:[#allocation7 + $0x98] sm:$0xf]  ;;  %v3056_v28 = vld [vmem:[#allocation7 + $0xa0] sm:$0xf0]  ;;  %v3078_v29 = vld [vmem:[#allocation9 + $0x94] sm:$0xf]  ;;  %v3861_v31 = vpack.c.b16 %v854_v21, %v853_v20 }
  0x58   : > { %763 = vmatpush.bf16.msra.mxu1 %v2756_v43  ;;  %1001 = vmatpush.bf16.msra.mxu3 %v2848_v44  ;;  %v2885_v30 = vld [vmem:[#allocation9 + $0x9c] sm:$0xf0]  ;;  %v2796_v33 = vor.u32 %v3056_v28, %v2795_v26  ;;  %v3053_v35 = vld [vmem:[#allocation7 + $0x88] sm:$0xf0]  ;;  %v2903_v36 = vld [vmem:[#allocation9 + $0xb0] sm:$0xf] }
  0x59   : > { %v2783_v32 = vld [vmem:[#allocation7 + $0x80] sm:$0xf]  ;;  %v2888_v34 = vor.u32 %v3078_v29, %v2885_v30  ;;  %v3083_v37 = vld [vmem:[#allocation9 + $0xb8] sm:$0xf0]  ;;  %v2873_v39 = vld [vmem:[#allocation9 + $0x84] sm:$0xf0] }
  0x5a   : > { %v3075_v38 = vld [vmem:[#allocation9 + $0x7c] sm:$0xf]  ;;  %v546_v40 = vld [vmem:[%s3853_s28 + $0x10] sm:$0xff]  ;;  %v3865_v41 = vor.u32 %v3083_v37, %v2903_v36  ;;  %v547_v42 = vld [vmem:[%s3853_s28 + $0x18] sm:$0xff]  ;;  %v2784_v48 = vor.u32 %v3053_v35, %v2783_v32  ;;  %s2481_s6 = sshll.u32 %s4116_s22, 4  ;;  %s2464_s19 = scalar_lea.sflag [#allocation6], %s3816_s20  ;;  %s2482_s6 = int_to_ptr.vmem [resolvable:$true] %s2481_s6 }
  0x5b   : > { %745 = vmatpush.bf16.msra.mxu0 %v2740_v52  ;;  %v2891_v43 = vld [vmem:[#allocation9 + $0x98] sm:$0xf]  ;;  %v3080_v44 = vld [vmem:[#allocation9 + $0xa0] sm:$0xf0]  ;;  %v554_v45 = vld [vmem:[%s3822_s27 + $0x10] sm:$0xff]  ;;  %v2876_v49 = vor.u32 %v3075_v38, %v2873_v39 }
  0x5c   : > { %764 = vmatpush.bf16.msra.mxu1 %v2744_v56  ;;  %1002 = vmatpush.bf16.msra.mxu3 %v2836_v57  ;;  %v555_v46 = vld [vmem:[%s3822_s27 + $0x18] sm:$0xff]  ;;  %v3873_v47 = vor.u32 %v3080_v44, %v2891_v43  ;;  %v2771_v50 = vld [vmem:[#allocation7 + $0x68] sm:$0xf]  ;;  %v2879_v51 = vld [vmem:[#allocation9 + $0x80] sm:$0xf]  ;;  %v550_v56 = vpack.c.bf16 %v546_v40, %v546_v40  ;;  %v551_v57 = vpack.c.bf16 %v547_v42, %v547_v42 }
  0x5d   : > { %v3077_v52 = vld [vmem:[#allocation9 + $0x88] sm:$0xf0]  ;;  %v3050_v53 = vld [vmem:[#allocation7 + $0x70] sm:$0xf0]  ;;  %v3072_v54 = vld [vmem:[#allocation9 + $0x64] sm:$0xf]  ;;  %v562_v58 = vpack.c.bf16 %v554_v45, %v554_v45  ;;  %v563_v59 = vpack.c.bf16 %v555_v46, %v555_v46 }
  0x5e   : > { %v2861_v55 = vld [vmem:[#allocation9 + $0x6c] sm:$0xf0]  ;;  %v3876_v60 = vor.u32 %v3077_v52, %v2879_v51  ;;  %v2772_v61 = vor.u32 %v3050_v53, %v2771_v50  ;;  %v2867_v0 = vld [vmem:[#allocation9 + $0x68] sm:$0xf]  ;;  %v3074_v1 = vld [vmem:[#allocation9 + $0x70] sm:$0xf0]  ;;  %v607_v3 = vunpack.c.l.b16 %v551_v57 }
  0x5f   : > { %746 = vmatpush.bf16.msra.mxu0 %v2728_v2  ;;  %v2864_v62 = vor.u32 %v3072_v54, %v2861_v55  ;;  %v2759_v63 = vld [vmem:[#allocation7 + $0x50] sm:$0xf]  ;;  %v606_v2 = vunpack.c.l.b16 %v550_v56  ;;  %v3047_v4 = vld [vmem:[#allocation7 + $0x58] sm:$0xf0]  ;;  %v3069_v5 = vld [vmem:[#allocation9 + $0x4c] sm:$0xf]  ;;  %v856_v8 = vunpack.c.l.b16 %v563_v59  ;;  %v3879_v9 = vor.u32 %v3074_v1, %v2867_v0 }
  0x60   : > { %765 = vmatpush.bf16.msra.mxu1 %v2732_v6  ;;  %1003 = vmatpush.bf16.msra.mxu3 %v2824_v7  ;;  %v2849_v6 = vld [vmem:[#allocation9 + $0x54] sm:$0xf0]  ;;  %v855_v7 = vunpack.c.l.b16 %v562_v58  ;;  %v2760_v10 = vor.u32 %v3047_v4, %v2759_v63  ;;  %v3044_v14 = vld [vmem:[#allocation7 + $0x40] sm:$0xf0]  ;;  %v3066_v15 = vld [vmem:[#allocation9 + $0x34] sm:$0xf] }
  0x61   : > { %v2852_v11 = vor.u32 %v3069_v5, %v2849_v6  ;;  %v2747_v12 = vld [vmem:[#allocation7 + $0x38] sm:$0xf]  ;;  %v3881_v13 = vpack.c.b16 %v607_v3, %v606_v2  ;;  %v2837_v16 = vld [vmem:[#allocation9 + $0x3c] sm:$0xf0]  ;;  %v2855_v21 = vld [vmem:[#allocation9 + $0x50] sm:$0xf] }
  0x62   : > { %v3883_v17 = vpack.c.b16 %v856_v8, %v855_v7  ;;  %v2748_v18 = vor.u32 %v3044_v14, %v2747_v12  ;;  %v2735_v20 = vld [vmem:[#allocation7 + $0x20] sm:$0xf]  ;;  %v2843_v28 = vld [vmem:[#allocation9 + $0x38] sm:$0xf]  ;;  %v3068_v29 = vld [vmem:[#allocation9 + $0x40] sm:$0xf0] }
  0x63   : > { %747 = vmatpush.bf16.msra.mxu0 %v2716_v19  ;;  %v2840_v19 = vor.u32 %v3066_v15, %v2837_v16  ;;  %v556_v30 = vld [vmem:[%s3822_s27 + $0x20] sm:$0xff]  ;;  %v557_v32 = vld [vmem:[%s3822_s27 + $0x28] sm:$0xff]  ;;  %v3038_v39 = vld [vmem:[#allocation7 + $0x10] sm:$0xf0] }
  0x64   : > { %766 = vmatpush.bf16.msra.mxu1 %v2720_v22  ;;  %1004 = vmatpush.bf16.msra.mxu3 %v2812_v23  ;;  %v3071_v22 = vld [vmem:[#allocation9 + $0x58] sm:$0xf0]  ;;  %v3041_v23 = vld [vmem:[#allocation7 + $0x28] sm:$0xf0]  ;;  %v2723_v36 = vld [vmem:[#allocation7 + $0x8] sm:$0xf]  ;;  %v564_v43 = vpack.c.bf16 %v556_v30, %v556_v30  ;;  %v565_v44 = vpack.c.bf16 %v557_v32, %v557_v32 }
  0x65   : > { %v2856_v26 = vor.u32 %v3071_v22, %v2855_v21  ;;  %v2831_v37 = vld [vmem:[#allocation9 + $0x20] sm:$0xf]  ;;  %v3065_v38 = vld [vmem:[#allocation9 + $0x28] sm:$0xf0]  ;;  %v3060_v40 = vld [vmem:[#allocation9 + $0x4] sm:$0xf]  ;;  %v2724_v46 = vor.u32 %v3038_v39, %v2723_v36 }
  0x66   : > { %748 = vmatmul.bf16.vlgmr.msra.gmra.mxu0 %v3859_v27  ;;  %v2813_v42 = vld [vmem:[#allocation9 + $0xc] sm:$0xf0]  ;;  %v2832_v45 = vor.u32 %v3065_v38, %v2831_v37  ;;  %v3062_v50 = vld [vmem:[#allocation9 + $0x10] sm:$0xf0]  ;;  %v857_v51 = vunpack.c.l.b16 %v564_v43  ;;  %v858_v52 = vunpack.c.l.b16 %v565_v44  ;;  %v559_v56 = vld [vmem:[%s3822_s27 + $0x38] sm:$0xff] }
  0x67   : > { %1026 = vmatpush.bf16.msrb.mxu0 %v2900_v25  ;;  %767 = vmatmul.bf16.vlgmr.msra.gmra.mxu1 %v3859_v27  ;;  %v2825_v25 = vld [vmem:[#allocation9 + $0x24] sm:$0xf0]  ;;  %v558_v55 = vld [vmem:[%s3822_s27 + $0x30] sm:$0xff]  ;;  %v567_v58 = vpack.c.bf16 %v559_v56, %v559_v56 }
  0x68   : > { %778 = vmatpush.bf16.msrb.mxu1 %v2808_v24  ;;  %1005 = vmatmul.bf16.vlgmr.msra.gmra.mxu3 %v3861_v31  ;;  %v3063_v24 = vld [vmem:[#allocation9 + $0x1c] sm:$0xf]  ;;  %v863_v54 = vpack.c.b16 %v858_v52, %v857_v51  ;;  %v566_v57 = vpack.c.bf16 %v558_v55, %v558_v55 }
  0x69   : > { %3124 = vmatpush.bf16.msrb.mxu3 %v3865_v41  ;;  %v2828_v35 = vor.u32 %v3063_v24, %v2825_v25 }
  0x6a   : > { %v859_v59 = vunpack.c.l.b16 %v566_v57 }
  0x6b   : > { %1027 = vmatpush.bf16.msrb.mxu0 %v2888_v34  ;;  %v2736_v34 = vor.u32 %v3041_v23, %v2735_v20 }
  0x6c   : > { %779 = vmatpush.bf16.msrb.mxu1 %v2796_v33  ;;  %v2844_v33 = vor.u32 %v3068_v29, %v2843_v28 }
  0x6d   : > { %3125 = vmatpush.bf16.msrb.mxu3 %v3873_v47 }
  0x6f   : > { %1028 = vmatpush.bf16.msrb.mxu0 %v2876_v49  ;;  %v2819_v49 = vld [vmem:[#allocation9 + $0x8] sm:$0xf] }
  0x70   : > { %780 = vmatpush.bf16.msrb.mxu1 %v2784_v48  ;;  %v2816_v48 = vor.u32 %v3060_v40, %v2813_v42  ;;  %v2820_v53 = vor.u32 %v3062_v50, %v2819_v49 }
  0x71   : > { %3126 = vmatpush.bf16.msrb.mxu3 %v3876_v60 }
  0x73   : > { %1029 = vmatpush.bf16.msrb.mxu0 %v2864_v62 }
  0x74   : > { %781 = vmatpush.bf16.msrb.mxu1 %v2772_v61  ;;  %v860_v61 = vunpack.c.l.b16 %v567_v58 }
  0x75   : > { %3127 = vmatpush.bf16.msrb.mxu3 %v3879_v9 }
  0x76   : > { %753 = vmatmul.bf16.gmra.mxu0 %v3881_v13 }
  0x77   : > { %1030 = vmatpush.bf16.msrb.mxu0 %v2852_v11  ;;  %772 = vmatmul.bf16.gmra.mxu1 %v3881_v13 }
  0x78   : > { %782 = vmatpush.bf16.msrb.mxu1 %v2760_v10  ;;  %1010 = vmatmul.bf16.gmra.mxu3 %v3883_v17 }
  0x79   : > { %3128 = vmatpush.bf16.msrb.mxu3 %v2856_v26 }
  0x7b   : > { %1031 = vmatpush.bf16.msrb.mxu0 %v2840_v19 }
  0x7c   : > { %783 = vmatpush.bf16.msrb.mxu1 %v2748_v18 }
  0x7d   : > { %3129 = vmatpush.bf16.msrb.mxu3 %v2844_v33 }
  0x7f   : > { %1032 = vmatpush.bf16.msrb.mxu0 %v2828_v35 }
  0x80   : > { %784 = vmatpush.bf16.msrb.mxu1 %v2736_v34 }
  0x81   : > { %3130 = vmatpush.bf16.msrb.mxu3 %v2832_v45 }
  0x83   : > { %1033 = vmatpush.bf16.msrb.mxu0 %v2816_v48 }
  0x84   : > { %785 = vmatpush.bf16.msrb.mxu1 %v2724_v46 }
  0x85   : > { %3131 = vmatpush.bf16.msrb.mxu3 %v2820_v53 }
  0x86   : > { %1034 = vmatmul.bf16.vlgmr.msrb.gmra.mxu0 %v3861_v31 }
  0x87   : > { %786 = vmatmul.bf16.vlgmr.msrb.gmra.mxu1 %v3859_v27 }
  0x88   : > { %1055 = vmatpush.bf16.msra.mxu1 %v3865_v41  ;;  %1015 = vmatmul.bf16.gmra.mxu3 %v863_v54  ;;  %v864_v41 = vpack.c.b16 %v860_v61, %v859_v59 }
  0x8c   : > { %1056 = vmatpush.bf16.msra.mxu1 %v3873_v47 }
  0x90   : > { %1057 = vmatpush.bf16.msra.mxu1 %v3876_v60 }
  0x94   : > { %1058 = vmatpush.bf16.msra.mxu1 %v3879_v9 }
  0x96   : > { %1039 = vmatmul.bf16.gmra.mxu0 %v3883_v17 }
  0x97   : > { %791 = vmatmul.bf16.gmra.mxu1 %v3881_v13 }
  0x98   : > { %1059 = vmatpush.bf16.msra.mxu1 %v2856_v26  ;;  %1020 = vmatmul.bf16.gmra.mxu3 %v864_v41 }
  0x9c   : > { %1060 = vmatpush.bf16.msra.mxu1 %v2844_v33 }
  0xa0   : > { %1061 = vmatpush.bf16.msra.mxu1 %v2832_v45 }
  0xa4   : > { %1062 = vmatpush.bf16.msra.mxu1 %v2820_v53 }
  0xa6   : > { %1044 = vmatmul.bf16.gmra.mxu0 %v863_v54 }
  0xa7   : > { %1063 = vmatmul.bf16.vlgmr.msra.gmra.mxu1 %v3861_v31 }
  0xa8   : > { %1078 = vmatmul.bf16.vlgmr.msrb.gmra.mxu3 %v864_v41 }
  0xb6   : > { %1049 = vmatmul.bf16.gmra.mxu0 %v864_v41 }
  0xb7   : > { %1068 = vmatmul.bf16.gmra.mxu1 %v3883_v17 }
  0xc7   : > { %1073 = vmatmul.bf16.gmra.mxu1 %v863_v54 }
  0xe3   : > { %v749_v27 = vpop.f32.mrf.mxu0 }
  0xe4   : > { %v768_v47 = vpop.f32.mrf.mxu1 }
  0xe5   : > { %v797_v60 = vpack.c.bf16 %v768_v47, %v749_v27 }
  0xe7   : > { %805 = vst [vmem:[#allocation2] sm:$0xff] %v797_v60 }
  0xeb   : > { %v1006_v62 = vpop.f32.mrf.mxu3  ;;  %v751_v63 = vpop.f32.mrf.mxu0 }
  0xec   : > { %v770_v0 = vpop.f32.mrf.mxu1 }
  0xed   : > { %v799_v1 = vpack.c.bf16 %v770_v0, %v751_v63 }
  0xee   : > { %v1292_v34 = vld [vmem:[#allocation2] sm:$0xf] }
  0xef   : > { %807 = vst [vmem:[#allocation2 + $0xc] sm:$0xff] %v799_v1 }
  0xf3   : > { %v1008_v2 = vpop.f32.mrf.mxu3  ;;  %v754_v3 = vpop.f32.mrf.mxu0 }
  0xf4   : > { %v773_v4 = vpop.f32.mrf.mxu1 }
  0xf5   : > { %v801_v5 = vpack.c.bf16 %v773_v4, %v754_v3 }
  0xf6   : > { %v1293_v51 = vld [vmem:[#allocation2 + $0xc] sm:$0xf] }
  0xf7   : > { %809 = vst [vmem:[#allocation2 + $0x18] sm:$0xff] %v801_v5 }
  0xfb   : > { %v1011_v31 = vpop.f32.mrf.mxu3  ;;  %v756_v6 = vpop.f32.mrf.mxu0 }
  0xfc   : > { %v775_v7 = vpop.f32.mrf.mxu1 }
  0xfd   : > { %v803_v8 = vpack.c.bf16 %v775_v7, %v756_v6 }
  0xfe   : > { %v1294_v1 = vld [vmem:[#allocation2 + $0x18] sm:$0xf] }
  0xff   : > { %811 = vst [vmem:[#allocation2 + $0x24] sm:$0xff] %v803_v8 }
 0x103   : > { %v1013_v9 = vpop.f32.mrf.mxu3  ;;  %v1035_v10 = vpop.f32.mrf.mxu0 }
 0x104   : > { %v787_v11 = vpop.f32.mrf.mxu1  ;;  %v1084_v12 = vpack.c.bf16 %v1035_v10, %v1006_v62 }
 0x105   : > { %v798_v13 = vpack.c.bf16 %v787_v11, %v787_v11 }
 0x106   : > { %1100 = vst [vmem:[#allocation3] sm:$0xff] %v1084_v12  ;;  %v1295_v12 = vld [vmem:[#allocation2 + $0x24] sm:$0xf] }
 0x107   : > { %806 = vst [vmem:[#allocation2 + $0x8] sm:$0xf] %v798_v13  ;;  %v1964_v13 = vld [vmem:[#allocation2 + $0x4] sm:$0xf] }
 0x10b   : > { %v1016_v14 = vpop.f32.mrf.mxu3  ;;  %v1037_v15 = vpop.f32.mrf.mxu0 }
 0x10c   : > { %v789_v16 = vpop.f32.mrf.mxu1  ;;  %v1086_v17 = vpack.c.bf16 %v1037_v15, %v1008_v2  ;;  %v1966_v2 = vld [vmem:[#allocation2 + $0x1c] sm:$0xf] }
 0x10d   : > { %v800_v18 = vpack.c.bf16 %v789_v16, %v789_v16  ;;  %v2907_v24 = vld [vmem:[#allocation3 + $0x4] sm:$0xf] }
 0x10e   : > { %1102 = vst [vmem:[#allocation3 + $0xc] sm:$0xff] %v1086_v17  ;;  %v1965_v17 = vld [vmem:[#allocation2 + $0x10] sm:$0xf] }
 0x10f   : > { %808 = vst [vmem:[#allocation2 + $0x14] sm:$0xf] %v800_v18  ;;  %v3910_v18 = vld [vmem:[%s3907_s29 + $0x1] sm:$0x1] }
 0x113   : > { %v1018_v19 = vpop.f32.mrf.mxu3  ;;  %v1040_v20 = vpop.f32.mrf.mxu0 }
 0x114   : > { %v792_v21 = vpop.f32.mrf.mxu1  ;;  %v1088_v22 = vpack.c.bf16 %v1040_v20, %v1011_v31 }
 0x115   : > { %v802_v23 = vpack.c.bf16 %v792_v21, %v792_v21  ;;  %v3084_v25 = vld [vmem:[#allocation3 + $0xc] sm:$0xf0]  ;;  %v3644_v21 = vmov 0  }
 0x116   : > { %1104 = vst [vmem:[#allocation3 + $0x18] sm:$0xff] %v1088_v22  ;;  %v2908_v26 = vor.u32 %v3084_v25, %v2907_v24  ;;  %v3920_v24 = vld [vmem:[%s529_s18] sm:$0xff]  }
 0x117   : > { %810 = vst [vmem:[#allocation2 + $0x20] sm:$0xf] %v802_v23  ;;  %v3118_v25 = vunpack.c.h.bf16 %v3920_v24 }
 0x118   : > { %1325 = vmatpush.bf16.xpose.msra.mxu2 %v2908_v26 }
 0x119   : > { %vm1133_vm1 = vcmp.gt.f32.partialorder %v3118_v25, 0.0 }
 0x11b   : > { %v1021_v28 = vpop.f32.mrf.mxu3  ;;  %v1042_v29 = vpop.f32.mrf.mxu0 }
 0x11c   : > { %v794_v30 = vpop.f32.mrf.mxu1  ;;  %v1090_v32 = vpack.c.bf16 %v1042_v29, %v1013_v9 }
 0x11d   : > { %v804_v33 = vpack.c.bf16 %v794_v30, %v794_v30  ;;  %v2911_v40 = vld [vmem:[#allocation3 + $0x1c] sm:$0xf] }
 0x11e   : > { %1106 = vst [vmem:[#allocation3 + $0x24] sm:$0xff] %v1090_v32 }
 0x11f   : > { %812 = vst [vmem:[#allocation2 + $0x2c] sm:$0xf] %v804_v33  ;;  %1326 = vmatmul.bf16.vlgmr.msra.gmra.mxu2 %v1292_v34  ;;  %v3930_v33 = vld [vmem:[%s3907_s29] sm:$0x1] }
 0x123   : > { %v1023_v35 = vpop.f32.mrf.mxu3  ;;  %v1045_v36 = vpop.f32.mrf.mxu0 }
 0x124   : > { %v1092_v37 = vpack.c.bf16 %v1045_v36, %v1016_v14  ;;  %v1064_v38 = vpop.f32.mrf.mxu1  ;;  %v1136_v36 = vunpack.c.l.bf16 %v3930_v33  ;;  %v3109_v33 = vld [vmem:[#allocation12 + $0x28] sm:$0xff] }
 0x125   : > { %v1085_v39 = vpack.c.bf16 %v1064_v38, %v1064_v38  ;;  %v3085_v42 = vld [vmem:[#allocation3 + $0x24] sm:$0xf0] }
 0x126   : > { %1108 = vst [vmem:[#allocation3 + $0x30] sm:$0xff] %v1092_v37  ;;  %v2912_v43 = vor.u32 %v3085_v42, %v2911_v40  ;;  %v3936_v37 = vld [vmem:[%s529_s18 + $0x8] sm:$0xff]   ;;  %vm1140_vm6 = vcmp.gt.f32.partialorder %v1136_v36, 0.0  ;;  %s2483_s18 = sshll.u32 %s2480_s26, 4  ;;  %s2484_s18 = int_to_ptr.hbm [resolvable:$true] %s2483_s18 }
 0x127   : > { %1101 = vst [vmem:[#allocation3 + $0x8] sm:$0xf] %v1085_v39  ;;  %v3121_v40 = vunpack.c.l.bf16 %v3936_v37  ;;  %s3540_s5 = sshra.s32 %s2484_s18, 4  ;;  %s3541_s5 = int_to_ptr.hbm [resolvable:$true] %s3540_s5 }
 0x128   : > { %1344 = vmatpush.bf16.xpose.msrb.mxu2 %v2912_v43  ;;  %v1144_v43 = vsel %vm1140_vm6, 1, %v3644_v21  ;;  %vm2068_vm6 = vcmask 64512   ;;  %p3547_p2 = scmp.lt.s32.totalorder %s3541_s5, %s4209_s9 }
 0x129   : > { %vm1134_vm7 = vcmp.gt.f32.partialorder %v3121_v40, 0.0 }
 0x12b   : > { %v1079_v44 = vpop.f32.mrf.mxu3  ;;  %v1047_v46 = vpop.f32.mrf.mxu0 }
 0x12c   : > { %v1097_v45 = vpack.c.bf16 %v1079_v44, %v1079_v44  ;;  %v1094_v48 = vpack.c.bf16 %v1047_v46, %v1018_v19  ;;  %v1066_v49 = vpop.f32.mrf.mxu1  ;;  %v1137_v19 = vunpack.c.l.bf16 %v3910_v18  ;;  %v3944_v44 = vld [vmem:[%s3907_s29 + $0x3] sm:$0x1]  ;;  %v1148_v46 = vperm.slane %v1144_v43, 0 }
 0x12d   : > { %v1087_v50 = vpack.c.bf16 %v1066_v49, %v1066_v49  ;;  %v2915_v55 = vld [vmem:[#allocation3 + $0x34] sm:$0xf] }
 0x12e   : > { %1113 = vst [vmem:[#allocation3 + $0x50] sm:$0xf] %v1097_v45  ;;  %vm1141_vm0 = vcmp.gt.f32.partialorder %v1137_v19, 0.0  ;;  %v3117_v45 = vunpack.c.l.bf16 %v3920_v24  ;;  %vm1152_vm11 = vcmp.eq.s32.totalorder %v1148_v46, 1  ;;  %v1968_v24 = vld [vmem:[#allocation2 + $0x8] sm:$0xf] }
 0x12f   : > { %1110 = vst [vmem:[#allocation3 + $0x3c] sm:$0xff] %v1094_v48  ;;  %1345 = vmatmul.bf16.vlgmr.msrb.gmra.mxu2 %v1293_v51  ;;  %v1145_v22 = vsel %vm1141_vm0, 1, %v3644_v21  ;;  %v1139_v48 = vunpack.c.l.bf16 %v3944_v44 }
 0x130   : > { %1103 = vst [vmem:[#allocation3 + $0x14] sm:$0xf] %v1087_v50  ;;  %v1149_v26 = vperm.slane %v1145_v22, 0  ;;  %vm1132_vm10 = vcmp.gt.f32.partialorder %v3117_v45, 0.0 }
 0x131   : > { %vm1143_vm12 = vcmp.gt.f32.partialorder %v1139_v48, 0.0  ;;  %vm1156_vm13 = vmand %vm1132_vm10, %vm1152_vm11 }
 0x132   : > { %vm1153_vm2 = vcmp.eq.s32.totalorder %v1149_v26, 1 }
 0x133   : > { %v1081_v52 = vpop.f32.mrf.mxu3  ;;  %v1050_v54 = vpop.f32.mrf.mxu0  ;;  %vm1157_vm3 = vmand %vm1133_vm1, %vm1153_vm2  ;;  %vm2173_vm1 = vcmask 1043456  }
 0x134   : > { %v1099_v53 = vpack.c.bf16 %v1081_v52, %v1081_v52  ;;  %v1096_v56 = vpack.c.bf16 %v1050_v54, %v1021_v28  ;;  %v1069_v57 = vpop.f32.mrf.mxu1  ;;  %v3924_v28 = vld [vmem:[%s3907_s29 + $0x2] sm:$0x1]  ;;  %v1147_v54 = vsel %vm1143_vm12, 1, %v3644_v21 }
 0x135   : > { %v1089_v58 = vpack.c.bf16 %v1069_v57, %v1069_v57  ;;  %v2938_v41 = vld [vmem:[#allocation3 + $0x50] sm:$0xf]  ;;  %v1138_v29 = vunpack.c.l.bf16 %v3924_v28  ;;  %v3122_v57 = vunpack.c.h.bf16 %v3936_v37 }
 0x136   : > { %1115 = vst [vmem:[#allocation3 + $0x5c] sm:$0xf] %v1099_v53  ;;  %v3086_v59 = vld [vmem:[#allocation3 + $0x3c] sm:$0xf0] }
 0x137   : > { %1112 = vst [vmem:[#allocation3 + $0x48] sm:$0xff] %v1096_v56  ;;  %v2916_v61 = vor.u32 %v3086_v59, %v2915_v55  ;;  %vm1142_vm5 = vcmp.gt.f32.partialorder %v1138_v29, 0.0  ;;  %vm1135_vm14 = vcmp.gt.f32.partialorder %v3122_v57, 0.0 }
 0x138   : > { %1105 = vst [vmem:[#allocation3 + $0x20] sm:$0xf] %v1089_v58  ;;  %v1146_v38 = vsel %vm1142_vm5, 1, %v3644_v21  ;;  %v1151_v58 = vperm.slane %v1147_v54, 0 }
 0x139   : > { %1363 = vmatpush.bf16.xpose.msra.mxu2 %v2916_v61  ;;  %v1150_v42 = vperm.slane %v1146_v38, 0 }
 0x13a   : > { %vm1155_vm15 = vcmp.eq.s32.totalorder %v1151_v58, 1 }
 0x13b   : > { %v1052_v27 = vpop.f32.mrf.mxu0  ;;  %vm1154_vm8 = vcmp.eq.s32.totalorder %v1150_v42, 1  ;;  %vm1159_vm0 = vmand %vm1135_vm14, %vm1155_vm15  ;;  %v3100_v42 = vld [vmem:[#allocation3 + $0x8] sm:$0xf0] }
 0x13c   : > { %v1098_v47 = vpack.c.bf16 %v1052_v27, %v1023_v35  ;;  %v1071_v60 = vpop.f32.mrf.mxu1  ;;  %vm1158_vm9 = vmand %vm1134_vm7, %vm1154_vm8 }
 0x13d   : > { %v3091_v62 = vld [vmem:[#allocation3 + $0x58] sm:$0xf0]  ;;  %v1091_v63 = vpack.c.bf16 %v1071_v60, %v1071_v60 }
 0x13e   : > { %v2939_v0 = vor.u32 %v3091_v62, %v2938_v41  ;;  %1114 = vst [vmem:[#allocation3 + $0x54] sm:$0xff] %v1098_v47  ;;  %v2919_v3 = vld [vmem:[#allocation3 + $0x4c] sm:$0xf] }
 0x13f   : > { %1107 = vst [vmem:[#allocation3 + $0x2c] sm:$0xf] %v1091_v63  ;;  %v2928_v5 = vld [vmem:[#allocation3 + $0x20] sm:$0xf] }
 0x140   : > { %1527 = vmatpush.bf16.msrb.mxu1 %v2939_v0  ;;  %1364 = vmatmul.bf16.vlgmr.msra.gmra.mxu2 %v1294_v1 }
 0x144   : > { %2025 = vmatpush.bf16.xpose.msra.mxu1 %v1966_v2  ;;  %v1074_v4 = vpop.f32.mrf.mxu1 }
 0x145   : > { %v1093_v31 = vpack.c.bf16 %v1074_v4, %v1074_v4  ;;  %v3087_v6 = vld [vmem:[#allocation3 + $0x54] sm:$0xf0]  ;;  %v3088_v4 = vld [vmem:[#allocation3 + $0x10] sm:$0xf0] }
 0x146   : > { %v2920_v7 = vor.u32 %v3087_v6, %v2919_v3  ;;  %v3089_v8 = vld [vmem:[#allocation3 + $0x28] sm:$0xf0]  ;;  %v2923_v3 = vld [vmem:[#allocation3 + $0x8] sm:$0xf] }
 0x147   : > { %1109 = vst [vmem:[#allocation3 + $0x38] sm:$0xf] %v1093_v31  ;;  %v2929_v9 = vor.u32 %v3089_v8, %v2928_v5  ;;  %v2924_v5 = vor.u32 %v3088_v4, %v2923_v3  ;;  %v2983_v4 = vld [vmem:[#allocation3 + $0x30] sm:$0xf] }
 0x148   : > { %1382 = vmatpush.bf16.xpose.msra.mxu3 %v2920_v7 }
 0x149   : > { %1461 = vmatpush.bf16.msrb.mxu2 %v2924_v5  ;;  %v3102_v5 = vld [vmem:[#allocation3 + $0x38] sm:$0xf0] }
 0x14c   : > { %v1076_v10 = vpop.f32.mrf.mxu1 }
 0x14d   : > { %v1095_v11 = vpack.c.bf16 %v1076_v10, %v1076_v10 }
 0x14e   : > { %v2933_v14 = vld [vmem:[#allocation3 + $0x38] sm:$0xf] }
 0x14f   : > { %1111 = vst [vmem:[#allocation3 + $0x44] sm:$0xf] %v1095_v11  ;;  %1383 = vmatmul.bf16.vlgmr.msra.gmra.mxu3 %v1295_v12 }
 0x150   : > { %1483 = vmatpush.bf16.msrb.mxu3 %v2929_v9 }
 0x154   : > { %1985 = vmatpush.bf16.xpose.msra.mxu3 %v1964_v13 }
 0x156   : > { %v3090_v15 = vld [vmem:[#allocation3 + $0x40] sm:$0xf0] }
 0x157   : > { %v2934_v16 = vor.u32 %v3090_v15, %v2933_v14 }
 0x159   : > { %1505 = vmatpush.bf16.msra.mxu0 %v2934_v16 }
 0x15d   : > { %2005 = vmatpush.bf16.xpose.msrb.mxu0 %v1965_v17 }
 0x1a2   : > { %v1327_v20 = vpop.f32.mrf.mxu2 }
 0x1a3   : > { %v1388_v53 = vmul.f32 0.088388346, %v1327_v20 }
 0x1a5   : > { %v1392_v56 = vsel %vm1156_vm13, %v1388_v53, -1e+09 }
 0x1a6   : > { %v1397_v59 = vsel %vm1396_vm4, %v1392_v56, -inf }
 0x1aa   : > { %v1329_v23 = vpop.f32.mrf.mxu2 }
 0x1ab   : > { %v3234_v23 = vpack.i.bf16 %v3118_v25, %v3117_v45  ;;  %v1970_v25 = vld [vmem:[#allocation2 + $0x20] sm:$0xf] }
 0x1b2   : > { %v1346_v30 = vpop.f32.mrf.mxu2 }
 0x1b3   : > { %v1389_v32 = vmul.f32 0.088388346, %v1346_v30 }
 0x1b5   : > { %v1393_v34 = vsel %vm1157_vm3, %v1389_v32, -1e+09 }
 0x1b6   : > { %v1400_v35 = vsel %vm1396_vm4, %v1393_v34, -inf }
 0x1b7   : > { %1401 = vmax.xlane.f32.xlu0 %v1400_v35  ;;  %v1967_v35 = vld [vmem:[#allocation2 + $0x28] sm:$0xf] }
 0x1ba   : > { %v1348_v39 = vpop.f32.mrf.mxu2 }
 0x1c3   : > { %v1365_v49 = vpop.f32.mrf.mxu2 }
 0x1c4   : > { %v1390_v50 = vmul.f32 0.088388346, %v1365_v49  ;;  %v2975_v49 = vld [vmem:[#allocation3] sm:$0xf] }
 0x1c6   : > { %v1394_v51 = vsel %vm1158_vm9, %v1390_v50, -1e+09  ;;  %v2976_v50 = vor.u32 %v3100_v42, %v2975_v49 }
 0x1c7   : > { %v1403_v52 = vsel %vm1396_vm4, %v1394_v51, -inf }
 0x1c8   : > { %1404 = vmax.xlane.f32.xlu0 %v1403_v52  ;;  %v2225_v52 = vsel %vm2173_vm1, %v1970_v25, 0 }
 0x1cb   : > { %v1367_v55 = vpop.f32.mrf.mxu2 }
 0x1d0   : > { %1398 = vmax.xlane.f32.xlu0 %v1397_v59  ;;  %v3101_v59 = vld [vmem:[#allocation3 + $0x20] sm:$0xf0] }
 0x1d2   : > { %v1384_v61 = vpop.f32.mrf.mxu3 }
 0x1d3   : > { %v1391_v41 = vmul.f32 0.088388346, %v1384_v61 }
 0x1d5   : > { %v1395_v27 = vsel %vm1159_vm0, %v1391_v41, -1e+09  ;;  %v2987_v41 = vld [vmem:[#allocation3 + $0x48] sm:$0xf] }
 0x1d6   : > { %v1406_v47 = vsel %vm1396_vm4, %v1395_v27, -inf }
 0x1d7   : > { %1407 = vmax.xlane.f32.xlu1 %v1406_v47  ;;  %v2979_v47 = vld [vmem:[#allocation3 + $0x18] sm:$0xf] }
 0x1da   : > { %v1386_v60 = vpop.f32.mrf.mxu3 }
 0x1db   : > { %v1969_v60 = vld [vmem:[#allocation2 + $0x14] sm:$0xf] }
 0x22a   : > { %v1402_v62 = vpop.xlane.xlu0 %1401 }
 0x22b   : > { %v1410_v63 = vsub.f32 %v1393_v34, %v1402_v62 }
 0x22d   : > { %v1415_v0 = vmul.f32 1.442695, %v1410_v63  ;;  %v2980_v63 = vor.u32 %v3101_v59, %v2979_v47 }
 0x22f   : > { %3328 = vpow2.f32 %v1415_v0  ;;  %v1971_v0 = vld [vmem:[#allocation2 + $0x2c] sm:$0xf] }
 0x230   : > { %v2250_v3 = vsel %vm2173_vm1, %v1971_v0, 0 }
 0x235   : > { %v3329_v1 = vpop.eup %3328 }
 0x236   : > { %v1424_v2 = vsel %vm1396_vm4, %v3329_v1, 0.0 }
 0x237   : > { %1425 = vadd.xlane.f32.xlu1 %v1424_v2  ;;  %v2200_v2 = vsel %vm2173_vm1, %v1969_v60, 0 }
 0x23b   : > { %v1405_v31 = vpop.xlane.xlu0 %1404 }
 0x23c   : > { %v1411_v6 = vsub.f32 %v1394_v51, %v1405_v31  ;;  %v2175_v51 = vsel %vm2173_vm1, %v1968_v24, 0  ;;  %v2984_v31 = vor.u32 %v3102_v5, %v2983_v4 }
 0x23e   : > { %v1417_v7 = vmul.f32 1.442695, %v1411_v6  ;;  %v3099_v6 = vld [vmem:[#allocation10 + $0x38] sm:$0xff] }
 0x23f   : > { %1613 = vmatpush.bf16.msra.mxu2 %v3099_v6 }
 0x240   : > { %3330 = vpow2.f32 %v1417_v7  ;;  %v3098_v7 = vld [vmem:[#allocation10 + $0x30] sm:$0xff] }
 0x243   : > { %v1399_v8 = vpop.xlane.xlu0 %1398  ;;  %1614 = vmatpush.bf16.msra.mxu2 %v3098_v7 }
 0x244   : > { %v1409_v9 = vsub.f32 %v1392_v56, %v1399_v8  ;;  %v3097_v8 = vld [vmem:[#allocation10 + $0x28] sm:$0xff] }
 0x246   : > { %v3331_v10 = vpop.eup %3330  ;;  %v1413_v11 = vmul.f32 1.442695, %v1409_v9  ;;  %v3096_v9 = vld [vmem:[#allocation10 + $0x20] sm:$0xff] }
 0x247   : > { %v1427_v12 = vsel %vm1396_vm4, %v3331_v10, 0.0  ;;  %1615 = vmatpush.bf16.msra.mxu2 %v3097_v8 }
 0x248   : > { %3332 = vpow2.f32 %v1413_v11  ;;  %1428 = vadd.xlane.f32.xlu2 %v1427_v12  ;;  %v3095_v11 = vld [vmem:[#allocation10 + $0x18] sm:$0xff]  ;;  %v3094_v12 = vld [vmem:[#allocation10 + $0x10] sm:$0xff] }
 0x24a   : > { %v1408_v13 = vpop.xlane.xlu1 %1407 }
 0x24b   : > { %v1412_v14 = vsub.f32 %v1395_v27, %v1408_v13  ;;  %v3103_v27 = vld [vmem:[#allocation3 + $0x50] sm:$0xf0]  ;;  %1616 = vmatpush.bf16.msra.mxu2 %v3096_v9 }
 0x24d   : > { %v1419_v16 = vmul.f32 1.442695, %v1412_v14  ;;  %v3093_v14 = vld [vmem:[#allocation10 + $0x8] sm:$0xff] }
 0x24e   : > { %v3333_v15 = vpop.eup %3332 }
 0x24f   : > { %v1421_v17 = vsel %vm1396_vm4, %v3333_v15, 0.0  ;;  %3334 = vpow2.f32 %v1419_v16  ;;  %1617 = vmatpush.bf16.msra.mxu2 %v3095_v11  ;;  %v3092_v16 = vld [vmem:[#allocation10] sm:$0xff] }
 0x250   : > { %1422 = vadd.xlane.f32.xlu0 %v1421_v17 }
 0x253   : > { %1618 = vmatpush.bf16.msra.mxu2 %v3094_v12  ;;  %v3246_v12 = vpack.i.bf16 %v3122_v57, %v3121_v40 }
 0x255   : > { %v3335_v20 = vpop.eup %3334 }
 0x256   : > { %v1430_v22 = vsel %vm1396_vm4, %v3335_v20, 0.0 }
 0x257   : > { %1431 = vadd.xlane.f32.xlu2 %v1430_v22  ;;  %1619 = vmatpush.bf16.msra.mxu2 %v3093_v14 }
 0x25b   : > { %1620 = vmatpush.bf16.msra.mxu2 %v3092_v16 }
 0x271   : > { %3235 = vxpose.xlu1.b32.start.end [1/1] (short) (narrow) %v3234_v23, 16 }
 0x2aa   : > { %v1426_v26 = vpop.xlane.xlu1 %1425 }
 0x2ab   : > { %3336 = vrcp.f32 %v1426_v26 }
 0x2b1   : > { %v3337_v30 = vpop.eup %3336 }
 0x2b2   : > { %v1438_v32 = vmul.f32 %v3337_v30, %v3329_v1  ;;  %v2988_v1 = vor.u32 %v3103_v27, %v2987_v41 }
 0x2b4   : > { %v1442_v34 = vpack.c.bf16 %v1438_v32, %v1438_v32 }
 0x2b6   : > { %2930 = vmatmul.msk.bf16.vlgmr.msrb.gmra.mxu3 %vm1396_vm4, %v1442_v34  ;;  %v3987_v34 = vld [vmem:[%s3977_s30 + $0x1] sm:$0x1] }
 0x2b7   : > { %2045 = vmatpush.bf16.xpose.msrb.mxu3 %v1967_v35 }
 0x2bb   : > { %v1429_v38 = vpop.xlane.xlu2 %1428 }
 0x2bc   : > { %3338 = vrcp.f32 %v1429_v38  ;;  %v1161_v38 = vunpack.c.l.bf16 %v3987_v34  ;;  %v3110_v34 = vld [vmem:[#allocation12 + $0x30] sm:$0xff] }
 0x2be   : > { %vm1805_vm7 = vcmp.gt.f32.partialorder %v1161_v38, 0.0 }
 0x2bf   : > { %v1809_v25 = vsel %vm1805_vm7, 1, %v3644_v21 }
 0x2c2   : > { %v3339_v39 = vpop.eup %3338 }
 0x2c3   : > { %v1439_v43 = vmul.f32 %v3339_v39, %v3331_v10  ;;  %v1423_v46 = vpop.xlane.xlu0 %1422 }
 0x2c4   : > { %3340 = vrcp.f32 %v1423_v46 }
 0x2c5   : > { %v1443_v45 = vpack.c.bf16 %v1439_v43, %v1439_v43 }
 0x2c6   : > { %1986 = vmatmul.bf16.vlgmr.msra.gmra.mxu3 %v2976_v50 }
 0x2c7   : > { %2935 = vmatmul.msk.bf16.vlgmr.msra.gmra.mxu0 %vm1396_vm4, %v1443_v45  ;;  %2234 = vmatpush.bf16.msra.mxu3 %v2225_v52 }
 0x2c8   : > { %2184 = vmatpush.bf16.msra.mxu0 %v2175_v51 }
 0x2ca   : > { %v3341_v53 = vpop.eup %3340  ;;  %v1432_v55 = vpop.xlane.xlu2 %1431 }
 0x2cb   : > { %v1437_v54 = vmul.f32 %v3341_v53, %v3333_v15  ;;  %3342 = vrcp.f32 %v1432_v55  ;;  %v3980_v15 = vld [vmem:[%s3977_s30] sm:$0x1] }
 0x2cc   : > { %v1160_v17 = vunpack.c.l.bf16 %v3980_v15  ;;  %v3277_v15 = vpack.i.bf16 %v1139_v48, %v1138_v29  ;;  %v3105_v29 = vld [vmem:[#allocation12 + $0x8] sm:$0xff] }
 0x2cd   : > { %v1441_v56 = vpack.c.bf16 %v1437_v54, %v1437_v54  ;;  %v1813_v54 = vperm.slane %v1809_v25, 0 }
 0x2ce   : > { %vm1804_vm2 = vcmp.gt.f32.partialorder %v1160_v17, 0.0 }
 0x2cf   : > { %2925 = vmatmul.msk.bf16.vlgmr.msrb.gmra.mxu2 %vm1396_vm4, %v1441_v56  ;;  %v1808_v22 = vsel %vm1804_vm2, 1, %v3644_v21  ;;  %vm4006_vm10 = vcmp.eq.s32.totalorder %v1813_v54, 1 }
 0x2d0   : > { %v1812_v26 = vperm.slane %v1808_v22, 0 }
 0x2d1   : > { %v3343_v58 = vpop.eup %3342 }
 0x2d2   : > { %v1440_v61 = vmul.f32 %v3343_v58, %v3335_v20  ;;  %vm3989_vm3 = vcmp.eq.s32.totalorder %v1812_v26, 1  ;;  %v4035_v26 = vld [vmem:[%s3977_s30 + $0x3] sm:$0x1] }
 0x2d3   : > { %v1163_v40 = vunpack.c.l.bf16 %v4035_v26 }
 0x2d4   : > { %v1444_v62 = vpack.c.bf16 %v1440_v61, %v1440_v61 }
 0x2d5   : > { %vm1807_vm0 = vcmp.gt.f32.partialorder %v1163_v40, 0.0 }
 0x2d6   : > { %2940 = vmatmul.msk.bf16.vlgmr.msrb.gmra.mxu1 %vm1396_vm4, %v1444_v62  ;;  %2046 = vmatmul.bf16.vlgmr.msrb.gmra.mxu3 %v2988_v1 }
 0x2d7   : > { %2006 = vmatmul.bf16.vlgmr.msrb.gmra.mxu0 %v2980_v63  ;;  %2209 = vmatpush.bf16.msrb.mxu1 %v2200_v2 }
 0x2d8   : > { %2259 = vmatpush.bf16.msrb.mxu0 %v2250_v3 }
 0x2e6   : > { %2026 = vmatmul.bf16.vlgmr.msra.gmra.mxu1 %v2984_v31 }
 0x315   : > { %v3236_v10 = vpop.trf.xlu1 }
 0x316   : > { %v3237_v30 = vunpack.i.l.bf16 %v3236_v10  ;;  %v3240_v55 = vunpack.i.h.bf16 %v3236_v10 }
 0x318   : > { %vm1796_vm4 = vcmp.gt.f32.partialorder %v3237_v30, 0.0  ;;  %vm1798_vm11 = vcmp.gt.f32.partialorder %v3240_v55, 0.0  ;;  %v1811_v30 = vsel %vm1807_vm0, 1, %v3644_v21 }
 0x319   : > { %vm1820_vm5 = vmand %vm1796_vm4, %vm3989_vm3 }
 0x31a   : > { %vm1822_vm12 = vmand %vm1798_vm11, %vm4006_vm10 }
 0x31d   : > { %v3241_v13 = vpop.trf.xlu1 }
 0x31e   : > { %v3242_v43 = vunpack.i.l.bf16 %v3241_v13  ;;  %v3245_v63 = vunpack.i.h.bf16 %v3241_v13 }
 0x320   : > { %vm1797_vm8 = vcmp.gt.f32.partialorder %v3242_v43, 0.0  ;;  %vm1799_vm13 = vcmp.gt.f32.partialorder %v3245_v63, 0.0 }
 0x321   : > { %vm1821_vm9 = vmand %vm1797_vm8, %vm3989_vm3 }
 0x322   : > { %vm1823_vm14 = vmand %vm1799_vm13, %vm4006_vm10 }
 0x339   : > { %v1485_v20 = vpop.f32.mrf.mxu3 }
 0x33a   : > { %v1534_v45 = vpack.c.bf16 %v1485_v20, %v1485_v20 }
 0x33c   : > { %v1558_v59 = vunpack.c.l.b16 %v1534_v45 }
 0x341   : > { %v1487_v23 = vpop.f32.mrf.mxu3 }
 0x342   : > { %v4032_v23 = vld [vmem:[%s3977_s30 + $0x2] sm:$0x1]  ;;  %s3542_s30 = scalar_lea.hbm %s3541_s5, 32 }
 0x343   : > { %v1162_v37 = vunpack.c.l.bf16 %v4032_v23  ;;  %v3106_v23 = vld [vmem:[#allocation12 + $0x10] sm:$0xff]  ;;  %p3543_p1 = scmp.ne.s32.totalorder %s3541_s5, %s3542_s30 }
 0x344   : > { %v1507_v32 = vpop.f32.mrf.mxu0 }
 0x345   : > { %v1535_v6 = vpack.c.bf16 %v1507_v32, %v1507_v32  ;;  %vm1806_vm15 = vcmp.gt.f32.partialorder %v1162_v37, 0.0  ;;  %p3544_p4 = pnand %p3543_p1, %p3786_p3 }
 0x346   : > { %v1810_v57 = vsel %vm1806_vm15, 1, %v3644_v21 }
 0x347   : > { %v1559_v9 = vunpack.c.l.b16 %v1535_v6  ;;  %v1814_v32 = vperm.slane %v1810_v57, 0  ;;  %p3545_p11 = pneg %p3544_p4 }
 0x349   : > { %v1987_v39 = vpop.f32.mrf.mxu3  ;;  %vm4045_vm1 = vcmp.eq.s32.totalorder %v1814_v32, 1 }
 0x34a   : > { %v2052_v42 = vmul.f32 0.088388346, %v1987_v39  ;;  %v1815_v39 = vperm.slane %v1811_v30, 0 }
 0x34c   : > { %v1509_v46 = vpop.f32.mrf.mxu0  ;;  %v2060_v49 = vsel %vm1820_vm5, %v2052_v42, -1e+09  ;;  %vm4049_vm2 = vcmp.eq.s32.totalorder %v1815_v39, 1 }
 0x34d   : > { %v2069_v24 = vsel %vm2068_vm6, %v2060_v49, -inf }
 0x34e   : > { %2070 = vmax.xlane.f32.xlu2 %v2069_v24 }
 0x351   : > { %v1989_v51 = vpop.f32.mrf.mxu3 }
 0x352   : > { %v1463_v50 = vpop.f32.mrf.mxu2  ;;  %v2053_v53 = vmul.f32 0.088388346, %v1989_v51 }
 0x353   : > { %v1533_v52 = vpack.c.bf16 %v1463_v50, %v1463_v50  ;;  %v1529_v56 = vpop.f32.mrf.mxu1 }
 0x354   : > { %v2007_v58 = vpop.f32.mrf.mxu0  ;;  %v4002_v41 = vsel %vm1821_vm9, %v2053_v53, -1e+09  ;;  %v1536_v5 = vpack.c.bf16 %v1529_v56, %v1529_v56 }
 0x355   : > { %v1557_v61 = vunpack.c.l.b16 %v1533_v52  ;;  %v2072_v27 = vsel %vm2068_vm6, %v4002_v41, -inf  ;;  %v2054_v60 = vmul.f32 0.088388346, %v2007_v58 }
 0x356   : > { %2073 = vmax.xlane.f32.xlu0 %v2072_v27  ;;  %v1560_v7 = vunpack.c.l.b16 %v1536_v5 }
 0x357   : > { %v1561_v47 = vpack.c.b16 %v1558_v59, %v1557_v61  ;;  %v4012_v1 = vsel %vm1822_vm12, %v2054_v60, -1e+09 }
 0x358   : > { %v2075_v4 = vsel %vm2068_vm6, %v4012_v1, -inf  ;;  %v1562_v11 = vpack.c.b16 %v1560_v7, %v1559_v9 }
 0x359   : > { %1621 = vmatmul.bf16.vlgmr.msra.gmra.mxu2 %v1561_v47  ;;  %v2047_v46 = vpop.f32.mrf.mxu3 }
 0x35a   : > { %v1465_v0 = vpop.f32.mrf.mxu2  ;;  %v2058_v50 = vmul.f32 0.088388346, %v2047_v46 }
 0x35b   : > { %v1531_v2 = vpop.f32.mrf.mxu1 }
 0x35c   : > { %v2009_v3 = vpop.f32.mrf.mxu0 }
 0x35d   : > { %v2055_v31 = vmul.f32 0.088388346, %v2009_v3 }
 0x35e   : > { %2076 = vmax.xlane.f32.xlu0 %v2075_v4 }
 0x35f   : > { %v4018_v8 = vsel %vm1823_vm14, %v2055_v31, -1e+09 }
 0x360   : > { %v2078_v10 = vsel %vm2068_vm6, %v4018_v8, -inf }
 0x361   : > { %v2049_v62 = vpop.f32.mrf.mxu3 }
 0x362   : > { %v2059_v2 = vmul.f32 0.088388346, %v2049_v62 }
 0x363   : > { %v2027_v35 = vpop.f32.mrf.mxu1 }
 0x364   : > { %v2056_v45 = vmul.f32 0.088388346, %v2027_v35 }
 0x366   : > { %2079 = vmax.xlane.f32.xlu0 %v2078_v10 }
 0x369   : > { %1626 = vmatmul.bf16.gmra.mxu2 %v1562_v11 }
 0x36b   : > { %v2029_v56 = vpop.f32.mrf.mxu1 }
 0x36c   : > { %v2057_v27 = vmul.f32 0.088388346, %v2029_v56 }
 0x377   : > { %3247 = vxpose.xlu2.b32.start.end [1/1] (short) (narrow) %v3246_v12, 16 }
 0x3c1   : > { %v2071_v13 = vpop.xlane.xlu2 %2070 }
 0x3c2   : > { %v2093_v14 = vsub.f32 %v2060_v49, %v2071_v13 }
 0x3c4   : > { %v2101_v16 = vmul.f32 1.442695, %v2093_v14 }
 0x3c6   : > { %3344 = vpow2.f32 %v2101_v16 }
 0x3c9   : > { %v2074_v52 = vpop.xlane.xlu0 %2073 }
 0x3ca   : > { %v2094_v47 = vsub.f32 %v4002_v41, %v2074_v52 }
 0x3cc   : > { %v4026_v20 = vpop.eup %3344  ;;  %v2103_v3 = vmul.f32 1.442695, %v2094_v47 }
 0x3cd   : > { %v2117_v22 = vsel %vm2068_vm6, %v4026_v20, 0.0 }
 0x3ce   : > { %2118 = vadd.xlane.f32.xlu1 %v2117_v22  ;;  %3346 = vpow2.f32 %v2103_v3 }
 0x3d1   : > { %v2077_v0 = vpop.xlane.xlu0 %2076 }
 0x3d2   : > { %v2095_v5 = vsub.f32 %v4012_v1, %v2077_v0 }
 0x3d4   : > { %v2105_v41 = vmul.f32 1.442695, %v2095_v5  ;;  %v3347_v7 = vpop.eup %3346 }
 0x3d5   : > { %v2120_v10 = vsel %vm2068_vm6, %v3347_v7, 0.0 }
 0x3d6   : > { %3348 = vpow2.f32 %v2105_v41 }
 0x3d9   : > { %3296 = vset.pattern.permute.xlu2 %v3644_v21  ;;  %v2080_v6 = vpop.xlane.xlu0 %2079 }
 0x3da   : > { %v2096_v9 = vsub.f32 %v4018_v8, %v2080_v6 }
 0x3dc   : > { %v2107_v11 = vmul.f32 1.442695, %v2096_v9  ;;  %v3349_v12 = vpop.eup %3348 }
 0x3dd   : > { %v2123_v13 = vsel %vm2068_vm6, %v3349_v12, 0.0 }
 0x3de   : > { %3350 = vpow2.f32 %v2107_v11  ;;  %v3258_v11 = vpack.i.bf16 %v1161_v38, %v1160_v17  ;;  %v3111_v17 = vld [vmem:[#allocation12 + $0x38] sm:$0xff] }
 0x3df   : > { %2362 = vmatpush.bf16.msrb.mxu2 %v3111_v17 }
 0x3e3   : > { %2363 = vmatpush.bf16.msrb.mxu2 %v3110_v34 }
 0x3e4   : > { %v3351_v14 = vpop.eup %3350 }
 0x3e5   : > { %v2126_v1 = vsel %vm2068_vm6, %v3351_v14, 0.0 }
 0x3e7   : > { %2364 = vmatpush.bf16.msrb.mxu2 %v3109_v33 }
 0x408   : > { %3278 = vxpose.xlu1.b32.start.end [1/1] (short) (narrow) %v3277_v15, 16 }
 0x410   : > { %v3248_v42 = vpop.trf.xlu2 }
 0x411   : > { %v3249_v49 = vunpack.i.l.bf16 %v3248_v42  ;;  %v3252_v24 = vunpack.i.h.bf16 %v3248_v42 }
 0x413   : > { %vm1800_vm3 = vcmp.gt.f32.partialorder %v3249_v49, 0.0  ;;  %vm1802_vm4 = vcmp.gt.f32.partialorder %v3252_v24, 0.0 }
 0x414   : > { %vm1824_vm5 = vmand %vm1800_vm3, %vm4045_vm1 }
 0x415   : > { %v2064_v51 = vsel %vm1824_vm5, %v2056_v45, -1e+09  ;;  %vm1826_vm7 = vmand %vm1802_vm4, %vm4049_vm2 }
 0x416   : > { %v2081_v53 = vsel %vm2068_vm6, %v2064_v51, -inf  ;;  %v2066_v54 = vsel %vm1826_vm7, %v2058_v50, -1e+09 }
 0x417   : > { %2082 = vmax.xlane.f32.xlu0 %v2081_v53  ;;  %v2087_v55 = vsel %vm2068_vm6, %v2066_v54, -inf }
 0x418   : > { %2088 = vmax.xlane.f32.xlu2 %v2087_v55  ;;  %v3253_v58 = vpop.trf.xlu2 }
 0x419   : > { %v3254_v59 = vunpack.i.l.bf16 %v3253_v58  ;;  %v3257_v61 = vunpack.i.h.bf16 %v3253_v58 }
 0x41b   : > { %vm1801_vm8 = vcmp.gt.f32.partialorder %v3254_v59, 0.0  ;;  %vm1803_vm10 = vcmp.gt.f32.partialorder %v3257_v61, 0.0 }
 0x41c   : > { %vm1825_vm9 = vmand %vm1801_vm8, %vm4045_vm1 }
 0x41d   : > { %v2065_v60 = vsel %vm1825_vm9, %v2057_v27, -1e+09  ;;  %vm1827_vm11 = vmand %vm1803_vm10, %vm4049_vm2 }
 0x41e   : > { %v2084_v63 = vsel %vm2068_vm6, %v2065_v60, -inf  ;;  %v2067_v4 = vsel %vm1827_vm11, %v2059_v2, -1e+09 }
 0x41f   : > { %2085 = vmax.xlane.f32.xlu0 %v2084_v63  ;;  %v2090_v31 = vsel %vm2068_vm6, %v2067_v4, -inf }
 0x427   : > { %2091 = vmax.xlane.f32.xlu0 %v2090_v31 }
 0x42f   : > { %2121 = vadd.xlane.f32.xlu0 %v2120_v10 }
 0x437   : > { %2124 = vadd.xlane.f32.xlu0 %v2123_v13  ;;  %v3289_v13 = vpack.i.bf16 %v1163_v40, %v1162_v37 }
 0x43f   : > { %2127 = vadd.xlane.f32.xlu0 %v2126_v1 }
 0x441   : > { %v2119_v46 = vpop.xlane.xlu1 %2118 }
 0x48a   : > { %v2083_v16 = vpop.xlane.xlu0 %2082 }
 0x48b   : > { %v2097_v22 = vsub.f32 %v2064_v51, %v2083_v16  ;;  %v2089_v30 = vpop.xlane.xlu2 %2088 }
 0x48c   : > { %v2099_v39 = vsub.f32 %v2066_v54, %v2089_v30 }
 0x48d   : > { %v2109_v57 = vmul.f32 1.442695, %v2097_v22 }
 0x48e   : > { %v2113_v49 = vmul.f32 1.442695, %v2099_v39 }
 0x48f   : > { %3352 = vpow2.f32 %v2109_v57 }
 0x492   : > { %v2086_v32 = vpop.xlane.xlu0 %2085 }
 0x493   : > { %v2098_v8 = vsub.f32 %v2065_v60, %v2086_v32 }
 0x495   : > { %v4071_v35 = vpop.eup %3352  ;;  %v2111_v42 = vmul.f32 1.442695, %v2098_v8 }
 0x496   : > { %v2129_v43 = vsel %vm2068_vm6, %v4071_v35, 0.0 }
 0x497   : > { %3354 = vpow2.f32 %v2111_v42  ;;  %2130 = vadd.xlane.f32.xlu0 %v2129_v43 }
 0x498   : > { %3356 = vrcp.f32 %v2119_v46 }
 0x499   : > { %3358 = vpow2.f32 %v2113_v49 }
 0x49a   : > { %v2092_v24 = vpop.xlane.xlu0 %2091 }
 0x49b   : > { %v2100_v45 = vsub.f32 %v2067_v4, %v2092_v24 }
 0x49d   : > { %v4075_v25 = vpop.eup %3354  ;;  %v2115_v51 = vmul.f32 1.442695, %v2100_v45 }
 0x49e   : > { %v2132_v50 = vsel %vm2068_vm6, %v4075_v25, 0.0  ;;  %v3357_v52 = vpop.eup %3356 }
 0x49f   : > { %2133 = vadd.xlane.f32.xlu0 %v2132_v50  ;;  %v4079_v54 = vpop.eup %3358  ;;  %v2149_v55 = vmul.f32 %v3357_v52, %v4026_v20 }
 0x4a0   : > { %v2135_v56 = vsel %vm2068_vm6, %v4079_v54, 0.0 }
 0x4a1   : > { %v2157_v59 = vpack.c.bf16 %v2149_v55, %v2149_v55 }
 0x4a2   : > { %v2122_v53 = vpop.xlane.xlu0 %2121 }
 0x4a3   : > { %3360 = vrcp.f32 %v2122_v53  ;;  %v2167_v62 = vunpack.c.l.b16 %v2157_v59 }
 0x4a4   : > { %3362 = vpow2.f32 %v2115_v51 }
 0x4a7   : > { %2136 = vadd.xlane.f32.xlu0 %v2135_v56 }
 0x4a9   : > { %v3361_v58 = vpop.eup %3360 }
 0x4aa   : > { %v2150_v61 = vmul.f32 %v3361_v58, %v3347_v7  ;;  %v2125_v27 = vpop.xlane.xlu0 %2124  ;;  %v4084_v47 = vpop.eup %3362 }
 0x4ab   : > { %3364 = vrcp.f32 %v2125_v27  ;;  %v2138_v0 = vsel %vm2068_vm6, %v4084_v47, 0.0 }
 0x4ac   : > { %v2158_v60 = vpack.c.bf16 %v2150_v61, %v2150_v61 }
 0x4ae   : > { %v2168_v63 = vunpack.c.l.b16 %v2158_v60 }
 0x4af   : > { %2139 = vadd.xlane.f32.xlu0 %v2138_v0 }
 0x4b0   : > { %v2169_v2 = vpack.c.b16 %v2168_v63, %v2167_v62 }
 0x4b1   : > { %v3365_v3 = vpop.eup %3364 }
 0x4b2   : > { %2989 = vmatmul.msk.bf16.vlgmr.msra.gmra.mxu0 %vm2068_vm6, %v2169_v2  ;;  %v2128_v20 = vpop.xlane.xlu0 %2127  ;;  %v2151_v4 = vmul.f32 %v3365_v3, %v3349_v12  ;;  %v3265_v12 = vpack.i.bf16 %v1137_v19, %v1136_v36  ;;  %v3108_v19 = vld [vmem:[#allocation12 + $0x20] sm:$0xff]  ;;  %v3107_v36 = vld [vmem:[#allocation12 + $0x18] sm:$0xff] }
 0x4b3   : > { %3366 = vrcp.f32 %v2128_v20  ;;  %2365 = vmatpush.bf16.msrb.mxu2 %v3108_v19  ;;  %v1622_v19 = vpop.f32.mrf.mxu2 }
 0x4b4   : > { %v2159_v31 = vpack.c.bf16 %v2151_v4, %v2151_v4 }
 0x4b6   : > { %v2193_v7 = vunpack.c.l.b16 %v2159_v31 }
 0x4b7   : > { %2366 = vmatpush.bf16.msrb.mxu2 %v3107_v36 }
 0x4b9   : > { %v3367_v5 = vpop.eup %3366 }
 0x4ba   : > { %v2152_v41 = vmul.f32 %v3367_v5, %v3351_v14  ;;  %v3104_v14 = vld [vmem:[#allocation12] sm:$0xff] }
 0x4bb   : > { %2367 = vmatpush.bf16.msrb.mxu2 %v3106_v23 }
 0x4bc   : > { %v2160_v6 = vpack.c.bf16 %v2152_v41, %v2152_v41  ;;  %v3279_v41 = vpop.trf.xlu1 }
 0x4bd   : > { %v3283_v17 = vunpack.i.h.bf16 %v3279_v41 }
 0x4be   : > { %v2194_v9 = vunpack.c.l.b16 %v2160_v6 }
 0x4bf   : > { %2368 = vmatpush.bf16.msrb.mxu2 %v3105_v29 }
 0x4c0   : > { %v2195_v10 = vpack.c.b16 %v2194_v9, %v2193_v7  ;;  %v3280_v7 = vunpack.i.l.bf16 %v3279_v41 }
 0x4c2   : > { %2990 = vmatmul.msk.bf16.vlgmr.msrb.gmra.mxu1 %vm2068_vm6, %v2195_v10 }
 0x4c3   : > { %2369 = vmatpush.bf16.msrb.mxu2 %v3104_v14 }
 0x4c4   : > { %v3284_v9 = vpop.trf.xlu1 }
 0x4c5   : > { %v3285_v10 = vunpack.i.l.bf16 %v3284_v9  ;;  %v3288_v34 = vunpack.i.h.bf16 %v3284_v9 }
 0x4d8   : > { %3259 = vxpose.xlu0.b32.start.end [1/1] (short) (narrow) %v3258_v11, 8 }
 0x4e0   : > { %3266 = vxpose.xlu0.b32.start.end [1/1] (short) (narrow) %v3265_v12, 16 }
 0x4f0   : > { %3290 = vxpose.xlu0.b32.start.end [1/1] (short) (narrow) %v3289_v13, 8 }
 0x50a   : > { %v2131_v18 = vpop.xlane.xlu0 %2130 }
 0x50b   : > { %3368 = vrcp.f32 %v2131_v18 }
 0x511   : > { %v3369_v26 = vpop.eup %3368 }
 0x512   : > { %v2134_v38 = vpop.xlane.xlu0 %2133  ;;  %v2153_v28 = vmul.f32 %v3369_v26, %v4071_v35 }
 0x513   : > { %3370 = vrcp.f32 %v2134_v38  ;;  %v3323_v38 = vpack.i.bf16 %v3288_v34, %v3283_v17 }
 0x514   : > { %v2161_v48 = vpack.c.bf16 %v2153_v28, %v2153_v28  ;;  %v1624_v28 = vpop.f32.mrf.mxu2 }
 0x516   : > { %v2218_v16 = vunpack.c.l.b16 %v2161_v48 }
 0x519   : > { %v3371_v44 = vpop.eup %3370 }
 0x51a   : > { %v2154_v37 = vmul.f32 %v3371_v44, %v4075_v25  ;;  %v2137_v40 = vpop.xlane.xlu0 %2136 }
 0x51b   : > { %3372 = vrcp.f32 %v2137_v40 }
 0x51c   : > { %v2162_v1 = vpack.c.bf16 %v2154_v37, %v2154_v37  ;;  %v1627_v40 = vpop.f32.mrf.mxu2 }
 0x51e   : > { %v2219_v22 = vunpack.c.l.b16 %v2162_v1 }
 0x520   : > { %v2220_v57 = vpack.c.b16 %v2219_v22, %v2218_v16 }
 0x521   : > { %v3373_v32 = vpop.eup %3372 }
 0x522   : > { %2991 = vmatmul.msk.bf16.vlgmr.msra.gmra.mxu3 %vm2068_vm6, %v2220_v57  ;;  %v2140_v30 = vpop.xlane.xlu0 %2139  ;;  %v2155_v8 = vmul.f32 %v3373_v32, %v4079_v54  ;;  %v1633_v32 = vld [vmem:[%s3853_s28 + $0x8] sm:$0xff] }
 0x523   : > { %3374 = vrcp.f32 %v2140_v30  ;;  %v1632_v30 = vld [vmem:[%s3853_s28] sm:$0xff] }
 0x524   : > { %v2163_v39 = vpack.c.bf16 %v2155_v8, %v2155_v8  ;;  %v1629_v14 = vpop.f32.mrf.mxu2 }
 0x526   : > { %v2243_v46 = vunpack.c.l.b16 %v2163_v39 }
 0x529   : > { %v3375_v35 = vpop.eup %3374 }
 0x52a   : > { %v2156_v42 = vmul.f32 %v3375_v35, %v4084_v47 }
 0x52c   : > { %v2164_v43 = vpack.c.bf16 %v2156_v42, %v2156_v42 }
 0x52e   : > { %v2244_v49 = vunpack.c.l.b16 %v2164_v43 }
 0x52f   : > { %v2186_v24 = vpop.f32.mrf.mxu0 }
 0x530   : > { %v2245_v25 = vpack.c.b16 %v2244_v49, %v2243_v46  ;;  %v2266_v45 = vpack.c.bf16 %v2186_v24, %v2186_v24 }
 0x532   : > { %2992 = vmatmul.msk.bf16.vlgmr.msrb.gmra.mxu0 %vm2068_vm6, %v2245_v25  ;;  %v2298_v52 = vunpack.c.l.b16 %v2266_v45  ;;  %v2391_v45 = vld [vmem:[%s3822_s27] sm:$0xff] }
 0x537   : > { %v2188_v50 = vpop.f32.mrf.mxu0 }
 0x538   : > { %v2267_v51 = vpack.c.bf16 %v2188_v50, %v2188_v50  ;;  %v2392_v50 = vld [vmem:[%s3822_s27 + $0x8] sm:$0xff] }
 0x53a   : > { %v2299_v53 = vunpack.c.l.b16 %v2267_v51 }
 0x53c   : > { %v2306_v55 = vpack.c.b16 %v2299_v53, %v2298_v52 }
 0x53e   : > { %2370 = vmatmul.bf16.vlgmr.msrb.gmra.mxu2 %v2306_v55 }
 0x53f   : > { %v2211_v56 = vpop.f32.mrf.mxu1 }
 0x540   : > { %v2268_v54 = vpack.c.bf16 %v2211_v56, %v2211_v56 }
 0x542   : > { %v2300_v61 = vunpack.c.l.b16 %v2268_v54 }
 0x547   : > { %v2213_v58 = vpop.f32.mrf.mxu1 }
 0x548   : > { %v2269_v59 = vpack.c.bf16 %v2213_v58, %v2213_v58 }
 0x54a   : > { %v2301_v27 = vunpack.c.l.b16 %v2269_v59 }
 0x54c   : > { %v2307_v47 = vpack.c.b16 %v2301_v27, %v2300_v61  ;;  %v2393_v61 = vld [vmem:[%s3822_s27 + $0x10] sm:$0xff]  ;;  %v2394_v27 = vld [vmem:[%s3822_s27 + $0x18] sm:$0xff] }
 0x54e   : > { %2375 = vmatmul.bf16.gmra.mxu2 %v2307_v47 }
 0x557   : > { %3302 = vset.pattern.permute.xlu0 %v3644_v21  ;;  %v3318_v21 = vpack.i.bf16 %v3285_v10, %v3280_v7 }
 0x57c   : > { %v3260_v60 = vpop.trf.xlu0 }
 0x57d   : > { %3298 = vperm.xlu2 %3296, %v3260_v60  }
 0x584   : > { %v3267_v62 = vpop.trf.xlu0 }
 0x585   : > { %v3268_v63 = vunpack.i.l.bf16 %v3267_v62  ;;  %v3271_v3 = vunpack.i.h.bf16 %v3267_v62 }
 0x58c   : > { %v3272_v0 = vpop.trf.xlu0 }
 0x58d   : > { %v3273_v2 = vunpack.i.l.bf16 %v3272_v0  ;;  %v3276_v4 = vunpack.i.h.bf16 %v3272_v0 }
 0x58f   : > { %v3308_v20 = vpack.i.bf16 %v3273_v2, %v3268_v63  ;;  %v3313_v31 = vpack.i.bf16 %v3276_v4, %v3271_v3  ;;  %v1634_v3 = vld [vmem:[%s3853_s28 + $0x10] sm:$0xff]  ;;  %v1635_v4 = vld [vmem:[%s3853_s28 + $0x18] sm:$0xff]  ;;  %s3546_s28 = scalar_lea.hbm %s4209_s9, 64 }
 0x590   : > { %p3548_p9 = scmp.lt.s32.totalorder %s3546_s28, %s3542_s30 }
 0x591   : > { %3309 = vperm.xlu2 %3296, %v3308_v20  }
 0x592   : > { %p3549_p10 = por %p3548_p9, %p3547_p2 }
 0x594   : > { %v3291_v5 = vpop.trf.xlu0  ;;  %p3550_p12 = pnand %p3549_p10, %p3545_p11 }
 0x595   : > { %3304 = vperm.xlu0 %3302, %v3291_v5  }
 0x599   : > { %3314 = vperm.xlu2 %3296, %v3313_v31  }
 0x5a1   : > { %3319 = vperm.xlu2 %3296, %v3318_v21  }
 0x5a5   : > { %v2236_v6 = vpop.f32.mrf.mxu3 }
 0x5a6   : > { %v2270_v11 = vpack.c.bf16 %v2236_v6, %v2236_v6 }
 0x5a8   : > { %v2302_v33 = vunpack.c.l.b16 %v2270_v11 }
 0x5a9   : > { %3324 = vperm.xlu2 %3296, %v3323_v38  }
 0x5ad   : > { %v2238_v12 = vpop.f32.mrf.mxu3 }
 0x5ae   : > { %v2271_v13 = vpack.c.bf16 %v2238_v12, %v2238_v12 }
 0x5af   : > { %v2261_v15 = vpop.f32.mrf.mxu0 }
 0x5b0   : > { %v2303_v18 = vunpack.c.l.b16 %v2271_v13  ;;  %v2272_v29 = vpack.c.bf16 %v2261_v15, %v2261_v15 }
 0x5b2   : > { %v2308_v36 = vpack.c.b16 %v2303_v18, %v2302_v33  ;;  %v2304_v48 = vunpack.c.l.b16 %v2272_v29 }
 0x5b4   : > { %2380 = vmatmul.bf16.gmra.mxu2 %v2308_v36 }
 0x5b7   : > { %v2263_v23 = vpop.f32.mrf.mxu0 }
 0x5b8   : > { %v2273_v26 = vpack.c.bf16 %v2263_v23, %v2263_v23 }
 0x5ba   : > { %v2305_v44 = vunpack.c.l.b16 %v2273_v26 }
 0x5bc   : > { %v2309_v37 = vpack.c.b16 %v2305_v44, %v2304_v48 }
 0x5c1   : > { %v2371_v1 = vpop.f32.mrf.mxu2 }
 0x5c4   : > { %2385 = vmatmul.bf16.gmra.mxu2 %v2309_v37 }
 0x5c9   : > { %v2373_v43 = vpop.f32.mrf.mxu2 }
 0x5d1   : > { %v2376_v46 = vpop.f32.mrf.mxu2 }
 0x5d7   : > { %v3299_v16 = vpop.permute.xlu2 %3298 }
 0x5d8   : > { %v3301_v22 = vunpack.i.h.bf16 %v3299_v16  ;;  %v3300_v57 = vunpack.i.l.bf16 %v3299_v16 }
 0x5d9   : > { %v2378_v59 = vpop.f32.mrf.mxu2 }
 0x5da   : > { %v1657_v8 = vmul.f32 %v3301_v22, %v1624_v28  ;;  %v1656_v35 = vmul.f32 %v3300_v57, %v1622_v19 }
 0x5dc   : > { %v1661_v39 = vadd.f32 %v1657_v8, %v1633_v32  ;;  %v1660_v42 = vadd.f32 %v1656_v35, %v1632_v30 }
 0x5de   : > { %1665 = vst [vmem:[%s4116_s22 + $0x8] sm:$0xff] %v1661_v39 }
 0x5df   : > { %1664 = vst [vmem:[%s4116_s22] sm:$0xff] %v1660_v42 }
 0x5eb   : > { %v3310_v49 = vpop.permute.xlu2 %3309 }
 0x5ec   : > { %v3312_v24 = vunpack.i.h.bf16 %v3310_v49  ;;  %v3311_v25 = vunpack.i.l.bf16 %v3310_v49 }
 0x5ee   : > { %v2440_v51 = vmul.f32 %v3312_v24, %v2373_v43  ;;  %v2439_v52 = vmul.f32 %v3311_v25, %v2371_v1 }
 0x5f0   : > { %v2448_v53 = vadd.f32 %v2440_v51, %v2392_v50  ;;  %v2447_v55 = vadd.f32 %v2439_v52, %v2391_v45 }
 0x5f2   : > { %2456 = vst [vmem:[%s4124_s25 + $0x8] sm:$0xff] %v2448_v53 }
 0x5f3   : > { %2455 = vst [vmem:[%s4124_s25] sm:$0xff] %v2447_v55  ;;  %v3315_v56 = vpop.permute.xlu2 %3314 }
 0x5f4   : > { %v3317_v54 = vunpack.i.h.bf16 %v3315_v56  ;;  %v3316_v58 = vunpack.i.l.bf16 %v3315_v56 }
 0x5f6   : > { %v2442_v47 = vmul.f32 %v3317_v54, %v2378_v59  ;;  %v2441_v60 = vmul.f32 %v3316_v58, %v2376_v46 }
 0x5f8   : > { %v2450_v62 = vadd.f32 %v2442_v47, %v2394_v27  ;;  %v2449_v63 = vadd.f32 %v2441_v60, %v2393_v61 }
 0x5fa   : > { %2458 = vst [vmem:[%s4124_s25 + $0x18] sm:$0xff] %v2450_v62 }
 0x5fb   : > { %2457 = vst [vmem:[%s4124_s25 + $0x10] sm:$0xff] %v2449_v63 }
 0x607   : > { %v3305_v0 = vpop.permute.xlu0 %3304 }
 0x608   : > { %v3307_v2 = vunpack.i.h.bf16 %v3305_v0  ;;  %v3306_v20 = vunpack.i.l.bf16 %v3305_v0 }
 0x60a   : > { %v1659_v5 = vmul.f32 %v3307_v2, %v1629_v14  ;;  %v1658_v31 = vmul.f32 %v3306_v20, %v1627_v40 }
 0x60c   : > { %v1663_v41 = vadd.f32 %v1659_v5, %v1635_v4  ;;  %v1662_v6 = vadd.f32 %v1658_v31, %v1634_v3 }
 0x60e   : > { %1667 = vst [vmem:[%s4116_s22 + $0x18] sm:$0xff] %v1663_v41 }
 0x60f   : > { %1666 = vst [vmem:[%s4116_s22 + $0x10] sm:$0xff] %v1662_v6 }
 0x610   : > { %3553 = shalt.err (!%p3550_p12)
}
 0x611   : > { %s3645_s22 = smov 128   ;;  %s3646_s26 = smov 8   ;;  %v3320_v7 = vpop.permute.xlu2 %3319  ;;  %v2395_v21 = vld [vmem:[%s3822_s27 + $0x20] sm:$0xff]  ;;  %v2396_v17 = vld [vmem:[%s3822_s27 + $0x28] sm:$0xff]  ;;  %v2397_v38 = vld [vmem:[%s3822_s27 + $0x30] sm:$0xff] }
 0x612   : > { %3150 = dma.vmem_to_hbm [thread:$0]  (%p3786_p3), %s2482_s6, 512, %s2484_s18, %s2464_s19, %s3645_s22, %s3645_s22, %s3646_s26   ;;  %v3321_v9 = vunpack.i.l.bf16 %v3320_v7  ;;  %v3322_v13 = vunpack.i.h.bf16 %v3320_v7 }
 0x613   : > { %s3114_s6 = sshll.u32 %s3723_s17, 6  ;;  %v2398_v44 = vld [vmem:[%s3822_s27 + $0x38] sm:$0xff]  ;;  %s2499_s30 = sshll.u32 %s4124_s25, 4  ;;  %s2500_s30 = int_to_ptr.vmem [resolvable:$true] %s2499_s30 }
 0x614   : > { %s2498_s5 = scalar_lea.hbm %s4210_s10, %s3114_s6  ;;  %s2469_s23 = scalar_lea.sflag [#allocation15], %s3816_s20 }
 0x615   : > { %s2501_s24 = sshll.u32 %s2498_s5, 4  ;;  %s3574_s6 = scalar_lea.hbm %s4210_s10, 128  ;;  %s2502_s24 = int_to_ptr.hbm [resolvable:$true] %s2501_s24 }
 0x616   : > { %s3568_s28 = sshra.s32 %s2502_s24, 4  ;;  %s3569_s28 = int_to_ptr.hbm [resolvable:$true] %s3568_s28 }
 0x617   : > { %s3570_s17 = scalar_lea.hbm %s3569_s28, 64  ;;  %p3575_p7 = scmp.lt.s32.totalorder %s3569_s28, %s4210_s10 }
 0x618   : > { %p3571_p13 = scmp.ne.s32.totalorder %s3569_s28, %s3570_s17  ;;  %p3576_p8 = scmp.lt.s32.totalorder %s3574_s6, %s3570_s17 }
 0x619   : > { %v3325_v18 = vpop.permute.xlu2 %3324 }
 0x61a   : > { %v3326_v19 = vunpack.i.l.bf16 %v3325_v18  ;;  %v3327_v28 = vunpack.i.h.bf16 %v3325_v18  ;;  %p3572_p0 = pnand %p3571_p13, %p3786_p3  ;;  %p3577_p1 = por %p3576_p8, %p3575_p7 }
 0x61c   : > { %p3573_p5 = pneg %p3572_p0 }
 0x61e   : > { %p3578_p4 = pnand %p3577_p1, %p3573_p5 }
 0x637   : > { %v2381_v10 = vpop.f32.mrf.mxu2 }
 0x638   : > { %v2443_v11 = vmul.f32 %v3321_v9, %v2381_v10 }
 0x63a   : > { %v2451_v12 = vadd.f32 %v2443_v11, %v2395_v21 }
 0x63c   : > { %2459 = vst [vmem:[%s4124_s25 + $0x20] sm:$0xff] %v2451_v12 }
 0x63f   : > { %v2383_v15 = vpop.f32.mrf.mxu2 }
 0x640   : > { %v2444_v34 = vmul.f32 %v3322_v13, %v2383_v15 }
 0x642   : > { %v2452_v33 = vadd.f32 %v2444_v34, %v2396_v17 }
 0x644   : > { %2460 = vst [vmem:[%s4124_s25 + $0x28] sm:$0xff] %v2452_v33 }
 0x647   : > { %v2386_v36 = vpop.f32.mrf.mxu2 }
 0x648   : > { %v2445_v23 = vmul.f32 %v3326_v19, %v2386_v36 }
 0x64a   : > { %v2453_v26 = vadd.f32 %v2445_v23, %v2397_v38 }
 0x64c   : > { %2461 = vst [vmem:[%s4124_s25 + $0x30] sm:$0xff] %v2453_v26 }
 0x64f   : > { %v2388_v29 = vpop.f32.mrf.mxu2 }
 0x650   : > { %v2446_v48 = vmul.f32 %v3327_v28, %v2388_v29 }
 0x652   : > { %v2454_v37 = vadd.f32 %v2446_v48, %v2398_v44 }
 0x654   : > { %2462 = vst [vmem:[%s4124_s25 + $0x38] sm:$0xff] %v2454_v37 }
 0x655   : > { %3581 = shalt.err (!%p3578_p4)
}
 0x656   : > { %3151 = dma.vmem_to_hbm [thread:$0]  (%p3786_p3), %s2500_s30, 1024, %s2502_s24, %s2469_s23, %s3645_s22, %s3645_s22, %s3646_s26  }
 0x657 PF: > { %s2516_s25 = sand.u32 1, %s3620_s13   ;;  %p4235_p11 = scmp.ge.s32.totalorder %s3632_s16, 2 }
 0x658   : > { %s2517_s19 = scalar_lea.sflag [#allocation6], %s2516_s25 }
 0x659   : > { %p3172_p2 = pnand %p4235_p11, %p3737_p6 }
 0x65b   : > { %p3173_p9 = pneg %p3172_p2 }
 0x65d   : > { %3611 = dma.done.wait (%p3173_p9), %s2517_s19, 512  }
 0x65e   : > { %3613 = vsyncadd (%p3173_p9), %s2517_s19, 4294966784  ;;  %s2527_s5 = scalar_lea.sflag [#allocation15], %s2516_s25 }
 0x65f   : > { %3615 = dma.done.wait (%p3173_p9), %s2527_s5, 1024  }
 0x660   : > { %3617 = vsyncadd (%p3173_p9), %s2527_s5, 4294966272  ;;  %p29_p3 = scmp.ge.s32.totalorder %s3776_s21, 4   ;;  %s4236_s13 = smov %s3624_s14 }
 0x661   : > { %s4237_s14 = smov %s3628_s15  ;;  %s4238_s15 = smov %s3792_s11 }
 0x662   : > { %s4239_s16 = smov %s3776_s21  ;;  %31 = sbr.rel (!%p29_p3) target bundleno = 13 (0xd), region = 146 }
 0x667   :  { %2533 = vsyncpa [#allocation5], 1 }
 0x668   :  { %2535 = vsyncpa [#allocation5 + $0x1], 1 }
 0x669   :  { %2536 = vsyncpa [#allocation8], 1 }
 0x66a   :  { %2537 = vsyncpa [#allocation11], 1 }
 0x66b   :  { %2538 = vsyncpa [#allocation6], 1 }
 0x66c   :  { %2540 = vsyncpa [#allocation6 + $0x1], 1 }
 0x66d   :  { %2541 = vsyncpa [#allocation15], 1 }
 0x66e   :  { %2543 = vsyncpa [#allocation15 + $0x1], 1 }

</bundles_post_ra>
